<compile_context>
chip_gen: v7x
topology: tpu7x:2x2x1
jax: 0.10.0
libtpu: 0.0.40
codegen_flags: <defaults>
</compile_context>

<pallas_src>
import numpy as np
import jax
import jax.numpy as jnp
from jax.experimental import pallas as pl
from jax.experimental.pallas import tpu as pltpu


# ----------------------------- fused Pallas kernel --------------------------

def net_kernel(x_ref, t1_ref, b1_ref, s1e_ref, s1o_ref, e1_ref,
               t2_ref, b2_ref, s2e_ref, s2o_ref, p2_ref,
               w1b_ref, fb1_ref, w2p_ref, fb2_ref,
               o_ref, a1_scr):
    f32 = jnp.float32
    bt = x_ref.shape[0]                      # batch tile

    # ---- conv1 (1->10, k=5): 5 Toeplitz matmuls over the raw image tile ----
    # rows = (b, h) in 0..23, lanes = x*10 + cout (240 lanes)
    y1 = b1_ref[...]                                            # (1, 240)
    for i in range(5):
        xi = x_ref[:, i:i + 24, :].reshape(bt * 24, 28)         # (bt*24, 28)
        y1 = y1 + jnp.dot(xi, t1_ref[i], preferred_element_type=f32)

    # ---- maxpool 2x2 + relu (pool = 0/1 selection matmuls + max) ----
    y1x = jnp.maximum(jnp.dot(y1, s1e_ref[...], preferred_element_type=f32),
                      jnp.dot(y1, s1o_ref[...], preferred_element_type=f32))   # (bt*24, 120)
    a1 = jnp.maximum(jnp.dot(e1_ref[0], y1x, preferred_element_type=f32),
                     jnp.dot(e1_ref[1], y1x, preferred_element_type=f32))      # (bt*12, 120)
    a1 = jnp.maximum(a1, 0.0)
    a1_scr[...] = a1.reshape(bt, 12, 120)    # VMEM resident for conv2 slicing

    # ---- conv2 (10->20, k=5); Dropout2d = identity at inference ----
    # rows = (b, g) in 0..7, lanes = x*20 + cout (160 lanes)
    y2 = b2_ref[...]                                            # (1, 160)
    for i in range(5):
        x2i = a1_scr[:, i:i + 8, :].reshape(bt * 8, 120)        # (bt*8, 120)
        y2 = y2 + jnp.dot(x2i, t2_ref[i], preferred_element_type=f32)

    # ---- maxpool 2x2 (x-direction via selection matmuls) ----
    y2x = jnp.maximum(jnp.dot(y2, s2e_ref[...], preferred_element_type=f32),
                      jnp.dot(y2, s2o_ref[...], preferred_element_type=f32))   # (bt*8, 80)

    # ---- h-pool + relu + flatten + fc1 (PyTorch NCHW flatten order is folded
    #      into the per-row-block fc1 weights; fc1 padded 50->64 lanes) ----
    h1 = fb1_ref[...]                                           # (1, 64)
    for h2 in range(4):
        a2_h2 = jnp.maximum(jnp.dot(p2_ref[h2, 0], y2x, preferred_element_type=f32),
                            jnp.dot(p2_ref[h2, 1], y2x, preferred_element_type=f32))
        a2_h2 = jnp.maximum(a2_h2, 0.0)                          # (bt, 80)
        h1 = h1 + jnp.dot(a2_h2, w1b_ref[h2], preferred_element_type=f32)
    h1 = jnp.maximum(h1, 0.0)
    # TODO(synk): F.dropout after fc1 is an inference-mode identity here.

    # ---- fc2 (padded to 128 lanes; padded bias = -1e30 masks pads) + log_softmax ----
    logits = jnp.dot(h1, w2p_ref[...], preferred_element_type=f32) + fb2_ref[...]  # (bt, 128)
    m = jnp.max(logits, axis=-1, keepdims=True)
    s = logits - m
    lse = jnp.log(jnp.sum(jnp.exp(s), axis=-1, keepdims=True))
    o_ref[...] = (s - lse)[:, :10]


# --------------------- host-side (one-time) weight preparation --------------

def prepare_params(torch_params, batch_tile):
    """Expand PyTorch-shaped weights into the kernel's matmul-form constants."""
    c1w, c1b, c2w, c2b, f1w, f1b, f2w, f2b = [
        np.asarray(p, np.float32) for p in torch_params]
    bt = batch_tile

    # conv1 Toeplitz bands: T1[i, w, x*10+co] = c1w[co,0,i,w-x]  (0<=w-x<5)
    T1 = np.zeros((5, 28, 24, 10), np.float32)
    for i in range(5):
        for j in range(5):
            for x in range(24):
                T1[i, x + j, x, :] = c1w[:, 0, i, j]
    T1 = T1.reshape(5, 28, 240)
    b1t = np.tile(c1b, 24).reshape(1, 240)

    # conv2 Toeplitz bands: T2[i, w*10+ci, x*20+co] = c2w[co,ci,i,w-x]
    T2 = np.zeros((5, 12, 10, 8, 20), np.float32)
    for i in range(5):
        for j in range(5):
            for x in range(8):
                T2[i, x + j, :, x, :] = c2w[:, :, i, j].T
    T2 = T2.reshape(5, 120, 160)
    b2t = np.tile(c2b, 8).reshape(1, 160)

    # 2x2 maxpool as 0/1 selections: lane (column) direction
    S1e = np.zeros((240, 120), np.float32)
    S1o = np.zeros((240, 120), np.float32)
    for x2 in range(12):
        for co in range(10):
            S1e[(2 * x2) * 10 + co, x2 * 10 + co] = 1.0
            S1o[(2 * x2 + 1) * 10 + co, x2 * 10 + co] = 1.0
    S2e = np.zeros((160, 80), np.float32)
    S2o = np.zeros((160, 80), np.float32)
    for x2 in range(4):
        for co in range(20):
            S2e[(2 * x2) * 20 + co, x2 * 20 + co] = 1.0
            S2o[(2 * x2 + 1) * 20 + co, x2 * 20 + co] = 1.0

    # row (H) direction pool selections, block-diagonal over the batch tile
    E1 = np.zeros((2, bt * 12, bt * 24), np.float32)
    for b in range(bt):
        for h2 in range(12):
            E1[0, b * 12 + h2, b * 24 + 2 * h2] = 1.0
            E1[1, b * 12 + h2, b * 24 + 2 * h2 + 1] = 1.0
    P2 = np.zeros((4, 2, bt, bt * 8), np.float32)
    for h2 in range(4):
        for dh in range(2):
            for b in range(bt):
                P2[h2, dh, b, b * 8 + 2 * h2 + dh] = 1.0

    # fc1: rows regrouped to the kernel's (x2, co) lane order per h2 block,
    # output padded 50 -> 64 lanes (zero pad).
    W1b = np.zeros((4, 80, 64), np.float32)
    for h2 in range(4):
        for x2 in range(4):
            for co in range(20):
                W1b[h2, x2 * 20 + co, :50] = f1w[:, co * 16 + h2 * 4 + x2]
    fb1p = np.zeros((1, 64), np.float32)
    fb1p[0, :50] = f1b

    # fc2: rows padded 50->64, outputs padded 10->128; padded bias = -1e30 so
    # the padded logits drop out of the log_softmax.
    W2p = np.zeros((64, 128), np.float32)
    W2p[:50, :10] = f2w.T
    fb2p = np.full((1, 128), -1e30, np.float32)
    fb2p[0, :10] = f2b

    return tuple(jnp.asarray(a) for a in
                 (T1, b1t, S1e, S1o, E1, T2, b2t, S2e, S2o, P2,
                  W1b, fb1p, W2p, fb2p))


# ------------------------------ pallas_call wrapper --------------------------

def net_forward(x_nchw, prepped):
    """x_nchw: (B, 1, 28, 28) float32 -> log-probs (B, 10)."""
    B = x_nchw.shape[0]
    bt = prepped[4].shape[1] // 12          # batch tile baked into E1
    assert B % bt == 0, (B, bt)
    x = x_nchw[:, 0, :, :]                  # (B, 28, 28); Cin == 1

    def full_spec(shape):
        nd = len(shape)
        return pl.BlockSpec(shape, lambda i, _nd=nd: (0,) * _nd)

    in_specs = [pl.BlockSpec((bt, 28, 28), lambda i: (i, 0, 0))]
    in_specs += [full_spec(a.shape) for a in prepped]

    return pl.pallas_call(
        net_kernel,
        out_shape=jax.ShapeDtypeStruct((B, 10), jnp.float32),
        grid=(B // bt,),
        in_specs=in_specs,
        out_specs=pl.BlockSpec((bt, 10), lambda i: (i, 0)),
        scratch_shapes=[pltpu.VMEM((bt, 12, 120), jnp.float32)],
        compiler_params=pltpu.CompilerParams(
            dimension_semantics=("parallel",)),
    )(x, *prepped)


# ------------------------------ init + reference ----------------------------

def init_params(key):
    """PyTorch-convention parameter shapes."""
    ks = jax.random.split(key, 8)
    c1w = 0.1 * jax.random.normal(ks[0], (10, 1, 5, 5), jnp.float32)
    c1b = 0.01 * jax.random.normal(ks[1], (10,), jnp.float32)
    c2w = 0.05 * jax.random.normal(ks[2], (20, 10, 5, 5), jnp.float32)
    c2b = 0.01 * jax.random.normal(ks[3], (20,), jnp.float32)
    f1w = 0.05 * jax.random.normal(ks[4], (50, 320), jnp.float32)
    f1b = 0.01 * jax.random.normal(ks[5], (50,), jnp.float32)
    f2w = 0.05 * jax.random.normal(ks[6], (10, 50), jnp.float32)
    f2b = 0.01 * jax.random.normal(ks[7], (10,), jnp.float32)
    return (c1w, c1b, c2w, c2b, f1w, f1b, f2w, f2b)


def net_forward_ref(x_nchw, torch_params):
    """Pure-JAX reference (same semantics as the PyTorch module, eval mode)."""
    c1w, c1b, c2w, c2b, f1w, f1b, f2w, f2b = torch_params
    B = x_nchw.shape[0]
    x = jnp.transpose(x_nchw, (0, 2, 3, 1))

    def conv(inp, w, b):
        Bq, H, W, C = inp.shape
        k = w.shape[-1]
        Ho, Wo = H - k + 1, W - k + 1
        cols = [inp[:, i:i + Ho, j:j + Wo, :] for i in range(k) for j in range(k)]
        p = jnp.stack(cols, axis=3).reshape(Bq * Ho * Wo, k * k * C)
        wm = jnp.transpose(w, (2, 3, 1, 0)).reshape(k * k * C, w.shape[0])
        return (p @ wm + b).reshape(Bq, Ho, Wo, w.shape[0])

    def pool_relu(y):
        Bq, H, W, C = y.shape
        y = y.reshape(Bq, H // 2, 2, W // 2, 2, C).max(axis=(2, 4))
        return jnp.maximum(y, 0.0)

    a1 = pool_relu(conv(x, c1w, c1b))
    a2 = pool_relu(conv(a1, c2w, c2b))
    flat = jnp.transpose(a2, (0, 3, 1, 2)).reshape(B, 320)
    h = jnp.maximum(flat @ f1w.T + f1b, 0.0)
    logits = h @ f2w.T + f2b
    return jax.nn.log_softmax(logits, axis=1)


if __name__ == "__main__":
    key = jax.random.PRNGKey(0)
    kx, kp = jax.random.split(key)
    x = jax.random.normal(kx, (2, 1, 28, 28), jnp.float32)   # NCHW input
    torch_params = init_params(kp)
    prepped = prepare_params(torch_params, batch_tile=2)

    out = jax.block_until_ready(net_forward(x, prepped))
    assert out.shape == (2, 10), out.shape

    ref = jax.block_until_ready(net_forward_ref(x, torch_params))
    assert jnp.allclose(out, ref, atol=2e-2, rtol=2e-2), (
        float(jnp.max(jnp.abs(out - ref))))

    print("KERNEL_OK")
</pallas_src>

<mosaic_0001>
module attributes {stable_mosaic.version = 11 : i64} {
  func.func @net_kernel(%arg0: i32, %arg1: memref<2x28x28xf32, #tpu.memory_space<vmem>>, %arg2: memref<5x28x240xf32, #tpu.memory_space<vmem>>, %arg3: memref<1x240xf32, #tpu.memory_space<vmem>>, %arg4: memref<240x120xf32, #tpu.memory_space<vmem>>, %arg5: memref<240x120xf32, #tpu.memory_space<vmem>>, %arg6: memref<2x24x48xf32, #tpu.memory_space<vmem>>, %arg7: memref<5x120x160xf32, #tpu.memory_space<vmem>>, %arg8: memref<1x160xf32, #tpu.memory_space<vmem>>, %arg9: memref<160x80xf32, #tpu.memory_space<vmem>>, %arg10: memref<160x80xf32, #tpu.memory_space<vmem>>, %arg11: memref<4x2x2x16xf32, #tpu.memory_space<vmem>>, %arg12: memref<4x80x64xf32, #tpu.memory_space<vmem>>, %arg13: memref<1x64xf32, #tpu.memory_space<vmem>>, %arg14: memref<64x128xf32, #tpu.memory_space<vmem>>, %arg15: memref<1x128xf32, #tpu.memory_space<vmem>>, %arg16: memref<2x10xf32, #tpu.memory_space<vmem>>, %arg17: memref<2x12x120xf32, #tpu.memory_space<vmem>>) attributes {dimension_semantics = [#tpu.dimension_semantics<parallel>], iteration_bounds = array<i64: 1>, scalar_prefetch = 0 : i64, scratch_operands = 1 : i64, tpu.core_type = #tpu.core_type<tc>, window_params = [{transform_indices = @transform_0, window_bounds = array<i64: 2, 28, 28>}, {pipeline_mode = #tpu.pipeline_mode<synchronous>, transform_indices = @transform_1, window_bounds = array<i64: 5, 28, 240>}, {pipeline_mode = #tpu.pipeline_mode<synchronous>, transform_indices = @transform_2, window_bounds = array<i64: 1, 240>}, {pipeline_mode = #tpu.pipeline_mode<synchronous>, transform_indices = @transform_3, window_bounds = array<i64: 240, 120>}, {pipeline_mode = #tpu.pipeline_mode<synchronous>, transform_indices = @transform_4, window_bounds = array<i64: 240, 120>}, {pipeline_mode = #tpu.pipeline_mode<synchronous>, transform_indices = @transform_5, window_bounds = array<i64: 2, 24, 48>}, {pipeline_mode = #tpu.pipeline_mode<synchronous>, transform_indices = @transform_6, window_bounds = array<i64: 5, 120, 160>}, {pipeline_mode = #tpu.pipeline_mode<synchronous>, transform_indices = @transform_7, window_bounds = array<i64: 1, 160>}, {pipeline_mode = #tpu.pipeline_mode<synchronous>, transform_indices = @transform_8, window_bounds = array<i64: 160, 80>}, {pipeline_mode = #tpu.pipeline_mode<synchronous>, transform_indices = @transform_9, window_bounds = array<i64: 160, 80>}, {pipeline_mode = #tpu.pipeline_mode<synchronous>, transform_indices = @transform_10, window_bounds = array<i64: 4, 2, 2, 16>}, {pipeline_mode = #tpu.pipeline_mode<synchronous>, transform_indices = @transform_11, window_bounds = array<i64: 4, 80, 64>}, {pipeline_mode = #tpu.pipeline_mode<synchronous>, transform_indices = @transform_12, window_bounds = array<i64: 1, 64>}, {pipeline_mode = #tpu.pipeline_mode<synchronous>, transform_indices = @transform_13, window_bounds = array<i64: 64, 128>}, {pipeline_mode = #tpu.pipeline_mode<synchronous>, transform_indices = @transform_14, window_bounds = array<i64: 1, 128>}, {transform_indices = @transform_15, window_bounds = array<i64: 2, 10>}]} {
    %c0 = arith.constant 0 : index
    %c0_0 = arith.constant 0 : index
    %0 = vector.load %arg3[%c0, %c0_0] : memref<1x240xf32, #tpu.memory_space<vmem>>, vector<1x240xf32>
    %c0_1 = arith.constant 0 : index
    %c0_2 = arith.constant 0 : index
    %c0_3 = arith.constant 0 : index
    %1 = vector.load %arg1[%c0_1, %c0_2, %c0_3] : memref<2x28x28xf32, #tpu.memory_space<vmem>>, vector<2x24x28xf32>
    %2 = vector.shape_cast %1 : vector<2x24x28xf32> to vector<48x28xf32>
    %c0_4 = arith.constant 0 : index
    %c0_5 = arith.constant 0 : index
    %c0_6 = arith.constant 0 : index
    %3 = vector.load %arg2[%c0_4, %c0_5, %c0_6] : memref<5x28x240xf32, #tpu.memory_space<vmem>>, vector<1x28x240xf32>
    %4 = vector.shape_cast %3 : vector<1x28x240xf32> to vector<28x240xf32>
    %cst = arith.constant dense<0.000000e+00> : vector<48x240xf32>
    %5 = tpu.matmul %2, %4, %cst {dimension_numbers = #tpu.dot_dimension_numbers<[1], [0], [0], [1], [0, 0, 1, 1], [], []>} : vector<48x28xf32>, vector<28x240xf32>, vector<48x240xf32> -> vector<48x240xf32>
    %6 = vector.broadcast %0 : vector<1x240xf32> to vector<48x240xf32>
    %7 = arith.addf %6, %5 : vector<48x240xf32>
    %c0_7 = arith.constant 0 : index
    %c1 = arith.constant 1 : index
    %c0_8 = arith.constant 0 : index
    %8 = vector.load %arg1[%c0_7, %c1, %c0_8] : memref<2x28x28xf32, #tpu.memory_space<vmem>>, vector<2x24x28xf32>
    %9 = vector.shape_cast %8 : vector<2x24x28xf32> to vector<48x28xf32>
    %c1_9 = arith.constant 1 : index
    %c0_10 = arith.constant 0 : index
    %c0_11 = arith.constant 0 : index
    %10 = vector.load %arg2[%c1_9, %c0_10, %c0_11] : memref<5x28x240xf32, #tpu.memory_space<vmem>>, vector<1x28x240xf32>
    %11 = vector.shape_cast %10 : vector<1x28x240xf32> to vector<28x240xf32>
    %cst_12 = arith.constant dense<0.000000e+00> : vector<48x240xf32>
    %12 = tpu.matmul %9, %11, %cst_12 {dimension_numbers = #tpu.dot_dimension_numbers<[1], [0], [0], [1], [0, 0, 1, 1], [], []>} : vector<48x28xf32>, vector<28x240xf32>, vector<48x240xf32> -> vector<48x240xf32>
    %13 = arith.addf %7, %12 : vector<48x240xf32>
    %c0_13 = arith.constant 0 : index
    %c2 = arith.constant 2 : index
    %c0_14 = arith.constant 0 : index
    %14 = vector.load %arg1[%c0_13, %c2, %c0_14] : memref<2x28x28xf32, #tpu.memory_space<vmem>>, vector<2x24x28xf32>
    %15 = vector.shape_cast %14 : vector<2x24x28xf32> to vector<48x28xf32>
    %c2_15 = arith.constant 2 : index
    %c0_16 = arith.constant 0 : index
    %c0_17 = arith.constant 0 : index
    %16 = vector.load %arg2[%c2_15, %c0_16, %c0_17] : memref<5x28x240xf32, #tpu.memory_space<vmem>>, vector<1x28x240xf32>
    %17 = vector.shape_cast %16 : vector<1x28x240xf32> to vector<28x240xf32>
    %cst_18 = arith.constant dense<0.000000e+00> : vector<48x240xf32>
    %18 = tpu.matmul %15, %17, %cst_18 {dimension_numbers = #tpu.dot_dimension_numbers<[1], [0], [0], [1], [0, 0, 1, 1], [], []>} : vector<48x28xf32>, vector<28x240xf32>, vector<48x240xf32> -> vector<48x240xf32>
    %19 = arith.addf %13, %18 : vector<48x240xf32>
    %c0_19 = arith.constant 0 : index
    %c3 = arith.constant 3 : index
    %c0_20 = arith.constant 0 : index
    %20 = vector.load %arg1[%c0_19, %c3, %c0_20] : memref<2x28x28xf32, #tpu.memory_space<vmem>>, vector<2x24x28xf32>
    %21 = vector.shape_cast %20 : vector<2x24x28xf32> to vector<48x28xf32>
    %c3_21 = arith.constant 3 : index
    %c0_22 = arith.constant 0 : index
    %c0_23 = arith.constant 0 : index
    %22 = vector.load %arg2[%c3_21, %c0_22, %c0_23] : memref<5x28x240xf32, #tpu.memory_space<vmem>>, vector<1x28x240xf32>
    %23 = vector.shape_cast %22 : vector<1x28x240xf32> to vector<28x240xf32>
    %cst_24 = arith.constant dense<0.000000e+00> : vector<48x240xf32>
    %24 = tpu.matmul %21, %23, %cst_24 {dimension_numbers = #tpu.dot_dimension_numbers<[1], [0], [0], [1], [0, 0, 1, 1], [], []>} : vector<48x28xf32>, vector<28x240xf32>, vector<48x240xf32> -> vector<48x240xf32>
    %25 = arith.addf %19, %24 : vector<48x240xf32>
    %c0_25 = arith.constant 0 : index
    %c4 = arith.constant 4 : index
    %c0_26 = arith.constant 0 : index
    %26 = vector.load %arg1[%c0_25, %c4, %c0_26] : memref<2x28x28xf32, #tpu.memory_space<vmem>>, vector<2x24x28xf32>
    %27 = vector.shape_cast %26 : vector<2x24x28xf32> to vector<48x28xf32>
    %c4_27 = arith.constant 4 : index
    %c0_28 = arith.constant 0 : index
    %c0_29 = arith.constant 0 : index
    %28 = vector.load %arg2[%c4_27, %c0_28, %c0_29] : memref<5x28x240xf32, #tpu.memory_space<vmem>>, vector<1x28x240xf32>
    %29 = vector.shape_cast %28 : vector<1x28x240xf32> to vector<28x240xf32>
    %cst_30 = arith.constant dense<0.000000e+00> : vector<48x240xf32>
    %30 = tpu.matmul %27, %29, %cst_30 {dimension_numbers = #tpu.dot_dimension_numbers<[1], [0], [0], [1], [0, 0, 1, 1], [], []>} : vector<48x28xf32>, vector<28x240xf32>, vector<48x240xf32> -> vector<48x240xf32>
    %31 = arith.addf %25, %30 : vector<48x240xf32>
    %c0_31 = arith.constant 0 : index
    %c0_32 = arith.constant 0 : index
    %32 = vector.load %arg4[%c0_31, %c0_32] : memref<240x120xf32, #tpu.memory_space<vmem>>, vector<240x120xf32>
    %cst_33 = arith.constant dense<0.000000e+00> : vector<48x120xf32>
    %33 = tpu.matmul %31, %32, %cst_33 {dimension_numbers = #tpu.dot_dimension_numbers<[1], [0], [0], [1], [0, 0, 1, 1], [], []>} : vector<48x240xf32>, vector<240x120xf32>, vector<48x120xf32> -> vector<48x120xf32>
    %c0_34 = arith.constant 0 : index
    %c0_35 = arith.constant 0 : index
    %34 = vector.load %arg5[%c0_34, %c0_35] : memref<240x120xf32, #tpu.memory_space<vmem>>, vector<240x120xf32>
    %cst_36 = arith.constant dense<0.000000e+00> : vector<48x120xf32>
    %35 = tpu.matmul %31, %34, %cst_36 {dimension_numbers = #tpu.dot_dimension_numbers<[1], [0], [0], [1], [0, 0, 1, 1], [], []>} : vector<48x240xf32>, vector<240x120xf32>, vector<48x120xf32> -> vector<48x120xf32>
    %36 = arith.maximumf %33, %35 : vector<48x120xf32>
    %c0_37 = arith.constant 0 : index
    %c0_38 = arith.constant 0 : index
    %c0_39 = arith.constant 0 : index
    %37 = vector.load %arg6[%c0_37, %c0_38, %c0_39] : memref<2x24x48xf32, #tpu.memory_space<vmem>>, vector<1x24x48xf32>
    %38 = vector.shape_cast %37 : vector<1x24x48xf32> to vector<24x48xf32>
    %cst_40 = arith.constant dense<0.000000e+00> : vector<24x120xf32>
    %39 = tpu.matmul %38, %36, %cst_40 {dimension_numbers = #tpu.dot_dimension_numbers<[1], [0], [0], [1], [0, 0, 1, 1], [], []>} : vector<24x48xf32>, vector<48x120xf32>, vector<24x120xf32> -> vector<24x120xf32>
    %c1_41 = arith.constant 1 : index
    %c0_42 = arith.constant 0 : index
    %c0_43 = arith.constant 0 : index
    %40 = vector.load %arg6[%c1_41, %c0_42, %c0_43] : memref<2x24x48xf32, #tpu.memory_space<vmem>>, vector<1x24x48xf32>
    %41 = vector.shape_cast %40 : vector<1x24x48xf32> to vector<24x48xf32>
    %cst_44 = arith.constant dense<0.000000e+00> : vector<24x120xf32>
    %42 = tpu.matmul %41, %36, %cst_44 {dimension_numbers = #tpu.dot_dimension_numbers<[1], [0], [0], [1], [0, 0, 1, 1], [], []>} : vector<24x48xf32>, vector<48x120xf32>, vector<24x120xf32> -> vector<24x120xf32>
    %43 = arith.maximumf %39, %42 : vector<24x120xf32>
    %cst_45 = arith.constant 0.000000e+00 : f32
    %44 = vector.broadcast %cst_45 : f32 to vector<24x120xf32>
    %45 = arith.maximumf %43, %44 : vector<24x120xf32>
    %46 = vector.shape_cast %45 : vector<24x120xf32> to vector<2x12x120xf32>
    %c0_46 = arith.constant 0 : index
    %c0_47 = arith.constant 0 : index
    %c0_48 = arith.constant 0 : index
    %47 = vector.load %arg17[%c0_46, %c0_47, %c0_48] : memref<2x12x120xf32, #tpu.memory_space<vmem>>, vector<2x12x120xf32>
    tpu.vector_store %arg17[%c0_46, %c0_47, %c0_48], %46 {strides = array<i32>} : memref<2x12x120xf32, #tpu.memory_space<vmem>>, vector<2x12x120xf32>,
    %c0_49 = arith.constant 0 : index
    %c0_50 = arith.constant 0 : index
    %48 = vector.load %arg8[%c0_49, %c0_50] : memref<1x160xf32, #tpu.memory_space<vmem>>, vector<1x160xf32>
    %c0_51 = arith.constant 0 : index
    %c0_52 = arith.constant 0 : index
    %c0_53 = arith.constant 0 : index
    %49 = vector.load %arg17[%c0_51, %c0_52, %c0_53] : memref<2x12x120xf32, #tpu.memory_space<vmem>>, vector<2x8x120xf32>
    %50 = vector.shape_cast %49 : vector<2x8x120xf32> to vector<16x120xf32>
    %c0_54 = arith.constant 0 : index
    %c0_55 = arith.constant 0 : index
    %c0_56 = arith.constant 0 : index
    %51 = vector.load %arg7[%c0_54, %c0_55, %c0_56] : memref<5x120x160xf32, #tpu.memory_space<vmem>>, vector<1x120x160xf32>
    %52 = vector.shape_cast %51 : vector<1x120x160xf32> to vector<120x160xf32>
    %cst_57 = arith.constant dense<0.000000e+00> : vector<16x160xf32>
    %53 = tpu.matmul %50, %52, %cst_57 {dimension_numbers = #tpu.dot_dimension_numbers<[1], [0], [0], [1], [0, 0, 1, 1], [], []>} : vector<16x120xf32>, vector<120x160xf32>, vector<16x160xf32> -> vector<16x160xf32>
    %54 = vector.broadcast %48 : vector<1x160xf32> to vector<16x160xf32>
    %55 = arith.addf %54, %53 : vector<16x160xf32>
    %c0_58 = arith.constant 0 : index
    %c1_59 = arith.constant 1 : index
    %c0_60 = arith.constant 0 : index
    %56 = vector.load %arg17[%c0_58, %c1_59, %c0_60] : memref<2x12x120xf32, #tpu.memory_space<vmem>>, vector<2x8x120xf32>
    %57 = vector.shape_cast %56 : vector<2x8x120xf32> to vector<16x120xf32>
    %c1_61 = arith.constant 1 : index
    %c0_62 = arith.constant 0 : index
    %c0_63 = arith.constant 0 : index
    %58 = vector.load %arg7[%c1_61, %c0_62, %c0_63] : memref<5x120x160xf32, #tpu.memory_space<vmem>>, vector<1x120x160xf32>
    %59 = vector.shape_cast %58 : vector<1x120x160xf32> to vector<120x160xf32>
    %cst_64 = arith.constant dense<0.000000e+00> : vector<16x160xf32>
    %60 = tpu.matmul %57, %59, %cst_64 {dimension_numbers = #tpu.dot_dimension_numbers<[1], [0], [0], [1], [0, 0, 1, 1], [], []>} : vector<16x120xf32>, vector<120x160xf32>, vector<16x160xf32> -> vector<16x160xf32>
    %61 = arith.addf %55, %60 : vector<16x160xf32>
    %c0_65 = arith.constant 0 : index
    %c2_66 = arith.constant 2 : index
    %c0_67 = arith.constant 0 : index
    %62 = vector.load %arg17[%c0_65, %c2_66, %c0_67] : memref<2x12x120xf32, #tpu.memory_space<vmem>>, vector<2x8x120xf32>
    %63 = vector.shape_cast %62 : vector<2x8x120xf32> to vector<16x120xf32>
    %c2_68 = arith.constant 2 : index
    %c0_69 = arith.constant 0 : index
    %c0_70 = arith.constant 0 : index
    %64 = vector.load %arg7[%c2_68, %c0_69, %c0_70] : memref<5x120x160xf32, #tpu.memory_space<vmem>>, vector<1x120x160xf32>
    %65 = vector.shape_cast %64 : vector<1x120x160xf32> to vector<120x160xf32>
    %cst_71 = arith.constant dense<0.000000e+00> : vector<16x160xf32>
    %66 = tpu.matmul %63, %65, %cst_71 {dimension_numbers = #tpu.dot_dimension_numbers<[1], [0], [0], [1], [0, 0, 1, 1], [], []>} : vector<16x120xf32>, vector<120x160xf32>, vector<16x160xf32> -> vector<16x160xf32>
    %67 = arith.addf %61, %66 : vector<16x160xf32>
    %c0_72 = arith.constant 0 : index
    %c3_73 = arith.constant 3 : index
    %c0_74 = arith.constant 0 : index
    %68 = vector.load %arg17[%c0_72, %c3_73, %c0_74] : memref<2x12x120xf32, #tpu.memory_space<vmem>>, vector<2x8x120xf32>
    %69 = vector.shape_cast %68 : vector<2x8x120xf32> to vector<16x120xf32>
    %c3_75 = arith.constant 3 : index
    %c0_76 = arith.constant 0 : index
    %c0_77 = arith.constant 0 : index
    %70 = vector.load %arg7[%c3_75, %c0_76, %c0_77] : memref<5x120x160xf32, #tpu.memory_space<vmem>>, vector<1x120x160xf32>
    %71 = vector.shape_cast %70 : vector<1x120x160xf32> to vector<120x160xf32>
    %cst_78 = arith.constant dense<0.000000e+00> : vector<16x160xf32>
    %72 = tpu.matmul %69, %71, %cst_78 {dimension_numbers = #tpu.dot_dimension_numbers<[1], [0], [0], [1], [0, 0, 1, 1], [], []>} : vector<16x120xf32>, vector<120x160xf32>, vector<16x160xf32> -> vector<16x160xf32>
    %73 = arith.addf %67, %72 : vector<16x160xf32>
    %c0_79 = arith.constant 0 : index
    %c4_80 = arith.constant 4 : index
    %c0_81 = arith.constant 0 : index
    %74 = vector.load %arg17[%c0_79, %c4_80, %c0_81] : memref<2x12x120xf32, #tpu.memory_space<vmem>>, vector<2x8x120xf32>
    %75 = vector.shape_cast %74 : vector<2x8x120xf32> to vector<16x120xf32>
    %c4_82 = arith.constant 4 : index
    %c0_83 = arith.constant 0 : index
    %c0_84 = arith.constant 0 : index
    %76 = vector.load %arg7[%c4_82, %c0_83, %c0_84] : memref<5x120x160xf32, #tpu.memory_space<vmem>>, vector<1x120x160xf32>
    %77 = vector.shape_cast %76 : vector<1x120x160xf32> to vector<120x160xf32>
    %cst_85 = arith.constant dense<0.000000e+00> : vector<16x160xf32>
    %78 = tpu.matmul %75, %77, %cst_85 {dimension_numbers = #tpu.dot_dimension_numbers<[1], [0], [0], [1], [0, 0, 1, 1], [], []>} : vector<16x120xf32>, vector<120x160xf32>, vector<16x160xf32> -> vector<16x160xf32>
    %79 = arith.addf %73, %78 : vector<16x160xf32>
    %c0_86 = arith.constant 0 : index
    %c0_87 = arith.constant 0 : index
    %80 = vector.load %arg9[%c0_86, %c0_87] : memref<160x80xf32, #tpu.memory_space<vmem>>, vector<160x80xf32>
    %cst_88 = arith.constant dense<0.000000e+00> : vector<16x80xf32>
    %81 = tpu.matmul %79, %80, %cst_88 {dimension_numbers = #tpu.dot_dimension_numbers<[1], [0], [0], [1], [0, 0, 1, 1], [], []>} : vector<16x160xf32>, vector<160x80xf32>, vector<16x80xf32> -> vector<16x80xf32>
    %c0_89 = arith.constant 0 : index
    %c0_90 = arith.constant 0 : index
    %82 = vector.load %arg10[%c0_89, %c0_90] : memref<160x80xf32, #tpu.memory_space<vmem>>, vector<160x80xf32>
    %cst_91 = arith.constant dense<0.000000e+00> : vector<16x80xf32>
    %83 = tpu.matmul %79, %82, %cst_91 {dimension_numbers = #tpu.dot_dimension_numbers<[1], [0], [0], [1], [0, 0, 1, 1], [], []>} : vector<16x160xf32>, vector<160x80xf32>, vector<16x80xf32> -> vector<16x80xf32>
    %84 = arith.maximumf %81, %83 : vector<16x80xf32>
    %c0_92 = arith.constant 0 : index
    %c0_93 = arith.constant 0 : index
    %85 = vector.load %arg13[%c0_92, %c0_93] : memref<1x64xf32, #tpu.memory_space<vmem>>, vector<1x64xf32>
    %c0_94 = arith.constant 0 : index
    %c0_95 = arith.constant 0 : index
    %c0_96 = arith.constant 0 : index
    %c0_97 = arith.constant 0 : index
    %86 = vector.load %arg11[%c0_94, %c0_95, %c0_96, %c0_97] : memref<4x2x2x16xf32, #tpu.memory_space<vmem>>, vector<1x1x2x16xf32>
    %87 = vector.shape_cast %86 : vector<1x1x2x16xf32> to vector<2x16xf32>
    %cst_98 = arith.constant dense<0.000000e+00> : vector<2x80xf32>
    %88 = tpu.matmul %87, %84, %cst_98 {dimension_numbers = #tpu.dot_dimension_numbers<[1], [0], [0], [1], [0, 0, 1, 1], [], []>} : vector<2x16xf32>, vector<16x80xf32>, vector<2x80xf32> -> vector<2x80xf32>
    %c0_99 = arith.constant 0 : index
    %c1_100 = arith.constant 1 : index
    %c0_101 = arith.constant 0 : index
    %c0_102 = arith.constant 0 : index
    %89 = vector.load %arg11[%c0_99, %c1_100, %c0_101, %c0_102] : memref<4x2x2x16xf32, #tpu.memory_space<vmem>>, vector<1x1x2x16xf32>
    %90 = vector.shape_cast %89 : vector<1x1x2x16xf32> to vector<2x16xf32>
    %cst_103 = arith.constant dense<0.000000e+00> : vector<2x80xf32>
    %91 = tpu.matmul %90, %84, %cst_103 {dimension_numbers = #tpu.dot_dimension_numbers<[1], [0], [0], [1], [0, 0, 1, 1], [], []>} : vector<2x16xf32>, vector<16x80xf32>, vector<2x80xf32> -> vector<2x80xf32>
    %92 = arith.maximumf %88, %91 : vector<2x80xf32>
    %cst_104 = arith.constant 0.000000e+00 : f32
    %93 = vector.broadcast %cst_104 : f32 to vector<2x80xf32>
    %94 = arith.maximumf %92, %93 : vector<2x80xf32>
    %c0_105 = arith.constant 0 : index
    %c0_106 = arith.constant 0 : index
    %c0_107 = arith.constant 0 : index
    %95 = vector.load %arg12[%c0_105, %c0_106, %c0_107] : memref<4x80x64xf32, #tpu.memory_space<vmem>>, vector<1x80x64xf32>
    %96 = vector.shape_cast %95 : vector<1x80x64xf32> to vector<80x64xf32>
    %cst_108 = arith.constant dense<0.000000e+00> : vector<2x64xf32>
    %97 = tpu.matmul %94, %96, %cst_108 {dimension_numbers = #tpu.dot_dimension_numbers<[1], [0], [0], [1], [0, 0, 1, 1], [], []>} : vector<2x80xf32>, vector<80x64xf32>, vector<2x64xf32> -> vector<2x64xf32>
    %98 = vector.broadcast %85 : vector<1x64xf32> to vector<2x64xf32>
    %99 = arith.addf %98, %97 : vector<2x64xf32>
    %c1_109 = arith.constant 1 : index
    %c0_110 = arith.constant 0 : index
    %c0_111 = arith.constant 0 : index
    %c0_112 = arith.constant 0 : index
    %100 = vector.load %arg11[%c1_109, %c0_110, %c0_111, %c0_112] : memref<4x2x2x16xf32, #tpu.memory_space<vmem>>, vector<1x1x2x16xf32>
    %101 = vector.shape_cast %100 : vector<1x1x2x16xf32> to vector<2x16xf32>
    %cst_113 = arith.constant dense<0.000000e+00> : vector<2x80xf32>
    %102 = tpu.matmul %101, %84, %cst_113 {dimension_numbers = #tpu.dot_dimension_numbers<[1], [0], [0], [1], [0, 0, 1, 1], [], []>} : vector<2x16xf32>, vector<16x80xf32>, vector<2x80xf32> -> vector<2x80xf32>
    %c1_114 = arith.constant 1 : index
    %c1_115 = arith.constant 1 : index
    %c0_116 = arith.constant 0 : index
    %c0_117 = arith.constant 0 : index
    %103 = vector.load %arg11[%c1_114, %c1_115, %c0_116, %c0_117] : memref<4x2x2x16xf32, #tpu.memory_space<vmem>>, vector<1x1x2x16xf32>
    %104 = vector.shape_cast %103 : vector<1x1x2x16xf32> to vector<2x16xf32>
    %cst_118 = arith.constant dense<0.000000e+00> : vector<2x80xf32>
    %105 = tpu.matmul %104, %84, %cst_118 {dimension_numbers = #tpu.dot_dimension_numbers<[1], [0], [0], [1], [0, 0, 1, 1], [], []>} : vector<2x16xf32>, vector<16x80xf32>, vector<2x80xf32> -> vector<2x80xf32>
    %106 = arith.maximumf %102, %105 : vector<2x80xf32>
    %cst_119 = arith.constant 0.000000e+00 : f32
    %107 = vector.broadcast %cst_119 : f32 to vector<2x80xf32>
    %108 = arith.maximumf %106, %107 : vector<2x80xf32>
    %c1_120 = arith.constant 1 : index
    %c0_121 = arith.constant 0 : index
    %c0_122 = arith.constant 0 : index
    %109 = vector.load %arg12[%c1_120, %c0_121, %c0_122] : memref<4x80x64xf32, #tpu.memory_space<vmem>>, vector<1x80x64xf32>
    %110 = vector.shape_cast %109 : vector<1x80x64xf32> to vector<80x64xf32>
    %cst_123 = arith.constant dense<0.000000e+00> : vector<2x64xf32>
    %111 = tpu.matmul %108, %110, %cst_123 {dimension_numbers = #tpu.dot_dimension_numbers<[1], [0], [0], [1], [0, 0, 1, 1], [], []>} : vector<2x80xf32>, vector<80x64xf32>, vector<2x64xf32> -> vector<2x64xf32>
    %112 = arith.addf %99, %111 : vector<2x64xf32>
    %c2_124 = arith.constant 2 : index
    %c0_125 = arith.constant 0 : index
    %c0_126 = arith.constant 0 : index
    %c0_127 = arith.constant 0 : index
    %113 = vector.load %arg11[%c2_124, %c0_125, %c0_126, %c0_127] : memref<4x2x2x16xf32, #tpu.memory_space<vmem>>, vector<1x1x2x16xf32>
    %114 = vector.shape_cast %113 : vector<1x1x2x16xf32> to vector<2x16xf32>
    %cst_128 = arith.constant dense<0.000000e+00> : vector<2x80xf32>
    %115 = tpu.matmul %114, %84, %cst_128 {dimension_numbers = #tpu.dot_dimension_numbers<[1], [0], [0], [1], [0, 0, 1, 1], [], []>} : vector<2x16xf32>, vector<16x80xf32>, vector<2x80xf32> -> vector<2x80xf32>
    %c2_129 = arith.constant 2 : index
    %c1_130 = arith.constant 1 : index
    %c0_131 = arith.constant 0 : index
    %c0_132 = arith.constant 0 : index
    %116 = vector.load %arg11[%c2_129, %c1_130, %c0_131, %c0_132] : memref<4x2x2x16xf32, #tpu.memory_space<vmem>>, vector<1x1x2x16xf32>
    %117 = vector.shape_cast %116 : vector<1x1x2x16xf32> to vector<2x16xf32>
    %cst_133 = arith.constant dense<0.000000e+00> : vector<2x80xf32>
    %118 = tpu.matmul %117, %84, %cst_133 {dimension_numbers = #tpu.dot_dimension_numbers<[1], [0], [0], [1], [0, 0, 1, 1], [], []>} : vector<2x16xf32>, vector<16x80xf32>, vector<2x80xf32> -> vector<2x80xf32>
    %119 = arith.maximumf %115, %118 : vector<2x80xf32>
    %cst_134 = arith.constant 0.000000e+00 : f32
    %120 = vector.broadcast %cst_134 : f32 to vector<2x80xf32>
    %121 = arith.maximumf %119, %120 : vector<2x80xf32>
    %c2_135 = arith.constant 2 : index
    %c0_136 = arith.constant 0 : index
    %c0_137 = arith.constant 0 : index
    %122 = vector.load %arg12[%c2_135, %c0_136, %c0_137] : memref<4x80x64xf32, #tpu.memory_space<vmem>>, vector<1x80x64xf32>
    %123 = vector.shape_cast %122 : vector<1x80x64xf32> to vector<80x64xf32>
    %cst_138 = arith.constant dense<0.000000e+00> : vector<2x64xf32>
    %124 = tpu.matmul %121, %123, %cst_138 {dimension_numbers = #tpu.dot_dimension_numbers<[1], [0], [0], [1], [0, 0, 1, 1], [], []>} : vector<2x80xf32>, vector<80x64xf32>, vector<2x64xf32> -> vector<2x64xf32>
    %125 = arith.addf %112, %124 : vector<2x64xf32>
    %c3_139 = arith.constant 3 : index
    %c0_140 = arith.constant 0 : index
    %c0_141 = arith.constant 0 : index
    %c0_142 = arith.constant 0 : index
    %126 = vector.load %arg11[%c3_139, %c0_140, %c0_141, %c0_142] : memref<4x2x2x16xf32, #tpu.memory_space<vmem>>, vector<1x1x2x16xf32>
    %127 = vector.shape_cast %126 : vector<1x1x2x16xf32> to vector<2x16xf32>
    %cst_143 = arith.constant dense<0.000000e+00> : vector<2x80xf32>
    %128 = tpu.matmul %127, %84, %cst_143 {dimension_numbers = #tpu.dot_dimension_numbers<[1], [0], [0], [1], [0, 0, 1, 1], [], []>} : vector<2x16xf32>, vector<16x80xf32>, vector<2x80xf32> -> vector<2x80xf32>
    %c3_144 = arith.constant 3 : index
    %c1_145 = arith.constant 1 : index
    %c0_146 = arith.constant 0 : index
    %c0_147 = arith.constant 0 : index
    %129 = vector.load %arg11[%c3_144, %c1_145, %c0_146, %c0_147] : memref<4x2x2x16xf32, #tpu.memory_space<vmem>>, vector<1x1x2x16xf32>
    %130 = vector.shape_cast %129 : vector<1x1x2x16xf32> to vector<2x16xf32>
    %cst_148 = arith.constant dense<0.000000e+00> : vector<2x80xf32>
    %131 = tpu.matmul %130, %84, %cst_148 {dimension_numbers = #tpu.dot_dimension_numbers<[1], [0], [0], [1], [0, 0, 1, 1], [], []>} : vector<2x16xf32>, vector<16x80xf32>, vector<2x80xf32> -> vector<2x80xf32>
    %132 = arith.maximumf %128, %131 : vector<2x80xf32>
    %cst_149 = arith.constant 0.000000e+00 : f32
    %133 = vector.broadcast %cst_149 : f32 to vector<2x80xf32>
    %134 = arith.maximumf %132, %133 : vector<2x80xf32>
    %c3_150 = arith.constant 3 : index
    %c0_151 = arith.constant 0 : index
    %c0_152 = arith.constant 0 : index
    %135 = vector.load %arg12[%c3_150, %c0_151, %c0_152] : memref<4x80x64xf32, #tpu.memory_space<vmem>>, vector<1x80x64xf32>
    %136 = vector.shape_cast %135 : vector<1x80x64xf32> to vector<80x64xf32>
    %cst_153 = arith.constant dense<0.000000e+00> : vector<2x64xf32>
    %137 = tpu.matmul %134, %136, %cst_153 {dimension_numbers = #tpu.dot_dimension_numbers<[1], [0], [0], [1], [0, 0, 1, 1], [], []>} : vector<2x80xf32>, vector<80x64xf32>, vector<2x64xf32> -> vector<2x64xf32>
    %138 = arith.addf %125, %137 : vector<2x64xf32>
    %cst_154 = arith.constant 0.000000e+00 : f32
    %139 = vector.broadcast %cst_154 : f32 to vector<2x64xf32>
    %140 = arith.maximumf %138, %139 : vector<2x64xf32>
    %c0_155 = arith.constant 0 : index
    %c0_156 = arith.constant 0 : index
    %141 = vector.load %arg14[%c0_155, %c0_156] : memref<64x128xf32, #tpu.memory_space<vmem>>, vector<64x128xf32>
    %cst_157 = arith.constant dense<0.000000e+00> : vector<2x128xf32>
    %142 = tpu.matmul %140, %141, %cst_157 {dimension_numbers = #tpu.dot_dimension_numbers<[1], [0], [0], [1], [0, 0, 1, 1], [], []>} : vector<2x64xf32>, vector<64x128xf32>, vector<2x128xf32> -> vector<2x128xf32>
    %c0_158 = arith.constant 0 : index
    %c0_159 = arith.constant 0 : index
    %143 = vector.load %arg15[%c0_158, %c0_159] : memref<1x128xf32, #tpu.memory_space<vmem>>, vector<1x128xf32>
    %144 = vector.broadcast %143 : vector<1x128xf32> to vector<2x128xf32>
    %145 = arith.addf %142, %144 : vector<2x128xf32>
    %cst_160 = arith.constant dense<0xFF800000> : vector<2xf32>
    %146 = vector.multi_reduction <maximumf>, %145, %cst_160 [1] : vector<2x128xf32> to vector<2xf32>
    %147 = vector.shape_cast %146 : vector<2xf32> to vector<2x1xf32>
    %148 = vector.broadcast %147 : vector<2x1xf32> to vector<2x128xf32>
    %149 = arith.subf %145, %148 : vector<2x128xf32>
    %150 = math.exp %149 : vector<2x128xf32>
    %cst_161 = arith.constant dense<0.000000e+00> : vector<2xf32>
    %151 = vector.multi_reduction <add>, %150, %cst_161 [1] : vector<2x128xf32> to vector<2xf32>
    %152 = vector.shape_cast %151 : vector<2xf32> to vector<2x1xf32>
    %153 = math.log %152 : vector<2x1xf32>
    %154 = vector.broadcast %153 : vector<2x1xf32> to vector<2x128xf32>
    %155 = arith.subf %149, %154 : vector<2x128xf32>
    %156 = vector.extract_strided_slice %155 {offsets = [0, 0], sizes = [2, 10], strides = [1, 1]} : vector<2x128xf32> to vector<2x10xf32>
    %c0_162 = arith.constant 0 : index
    %c0_163 = arith.constant 0 : index
    %157 = vector.load %arg16[%c0_162, %c0_163] : memref<2x10xf32, #tpu.memory_space<vmem>>, vector<2x10xf32>
    tpu.vector_store %arg16[%c0_162, %c0_163], %156 {strides = array<i32>} : memref<2x10xf32, #tpu.memory_space<vmem>>, vector<2x10xf32>,
    return
  }
  func.func @transform_0(%arg0: i32) -> (i32, i32, i32) {
    %c0_i32 = arith.constant 0 : i32
    %c0_i32_0 = arith.constant 0 : i32
    %c0_i32_1 = arith.constant 0 : i32
    return %arg0, %c0_i32, %c0_i32_0 : i32, i32, i32
  }
  func.func @transform_1(%arg0: i32) -> (i32, i32, i32) {
    %c0_i32 = arith.constant 0 : i32
    %c0_i32_0 = arith.constant 0 : i32
    %c0_i32_1 = arith.constant 0 : i32
    %c0_i32_2 = arith.constant 0 : i32
    return %c0_i32, %c0_i32_0, %c0_i32_1 : i32, i32, i32
  }
  func.func @transform_2(%arg0: i32) -> (i32, i32) {
    %c0_i32 = arith.constant 0 : i32
    %c0_i32_0 = arith.constant 0 : i32
    %c0_i32_1 = arith.constant 0 : i32
    return %c0_i32, %c0_i32_0 : i32, i32
  }
  func.func @transform_3(%arg0: i32) -> (i32, i32) {
    %c0_i32 = arith.constant 0 : i32
    %c0_i32_0 = arith.constant 0 : i32
    %c0_i32_1 = arith.constant 0 : i32
    return %c0_i32, %c0_i32_0 : i32, i32
  }
  func.func @transform_4(%arg0: i32) -> (i32, i32) {
    %c0_i32 = arith.constant 0 : i32
    %c0_i32_0 = arith.constant 0 : i32
    %c0_i32_1 = arith.constant 0 : i32
    return %c0_i32, %c0_i32_0 : i32, i32
  }
  func.func @transform_5(%arg0: i32) -> (i32, i32, i32) {
    %c0_i32 = arith.constant 0 : i32
    %c0_i32_0 = arith.constant 0 : i32
    %c0_i32_1 = arith.constant 0 : i32
    %c0_i32_2 = arith.constant 0 : i32
    return %c0_i32, %c0_i32_0, %c0_i32_1 : i32, i32, i32
  }
  func.func @transform_6(%arg0: i32) -> (i32, i32, i32) {
    %c0_i32 = arith.constant 0 : i32
    %c0_i32_0 = arith.constant 0 : i32
    %c0_i32_1 = arith.constant 0 : i32
    %c0_i32_2 = arith.constant 0 : i32
    return %c0_i32, %c0_i32_0, %c0_i32_1 : i32, i32, i32
  }
  func.func @transform_7(%arg0: i32) -> (i32, i32) {
    %c0_i32 = arith.constant 0 : i32
    %c0_i32_0 = arith.constant 0 : i32
    %c0_i32_1 = arith.constant 0 : i32
    return %c0_i32, %c0_i32_0 : i32, i32
  }
  func.func @transform_8(%arg0: i32) -> (i32, i32) {
    %c0_i32 = arith.constant 0 : i32
    %c0_i32_0 = arith.constant 0 : i32
    %c0_i32_1 = arith.constant 0 : i32
    return %c0_i32, %c0_i32_0 : i32, i32
  }
  func.func @transform_9(%arg0: i32) -> (i32, i32) {
    %c0_i32 = arith.constant 0 : i32
    %c0_i32_0 = arith.constant 0 : i32
    %c0_i32_1 = arith.constant 0 : i32
    return %c0_i32, %c0_i32_0 : i32, i32
  }
  func.func @transform_10(%arg0: i32) -> (i32, i32, i32, i32) {
    %c0_i32 = arith.constant 0 : i32
    %c0_i32_0 = arith.constant 0 : i32
    %c0_i32_1 = arith.constant 0 : i32
    %c0_i32_2 = arith.constant 0 : i32
    %c0_i32_3 = arith.constant 0 : i32
    return %c0_i32, %c0_i32_0, %c0_i32_1, %c0_i32_2 : i32, i32, i32, i32
  }
  func.func @transform_11(%arg0: i32) -> (i32, i32, i32) {
    %c0_i32 = arith.constant 0 : i32
    %c0_i32_0 = arith.constant 0 : i32
    %c0_i32_1 = arith.constant 0 : i32
    %c0_i32_2 = arith.constant 0 : i32
    return %c0_i32, %c0_i32_0, %c0_i32_1 : i32, i32, i32
  }
  func.func @transform_12(%arg0: i32) -> (i32, i32) {
    %c0_i32 = arith.constant 0 : i32
    %c0_i32_0 = arith.constant 0 : i32
    %c0_i32_1 = arith.constant 0 : i32
    return %c0_i32, %c0_i32_0 : i32, i32
  }
  func.func @transform_13(%arg0: i32) -> (i32, i32) {
    %c0_i32 = arith.constant 0 : i32
    %c0_i32_0 = arith.constant 0 : i32
    %c0_i32_1 = arith.constant 0 : i32
    return %c0_i32, %c0_i32_0 : i32, i32
  }
  func.func @transform_14(%arg0: i32) -> (i32, i32) {
    %c0_i32 = arith.constant 0 : i32
    %c0_i32_0 = arith.constant 0 : i32
    %c0_i32_1 = arith.constant 0 : i32
    return %c0_i32, %c0_i32_0 : i32, i32
  }
  func.func @transform_15(%arg0: i32) -> (i32, i32) {
    %c0_i32 = arith.constant 0 : i32
    %c0_i32_0 = arith.constant 0 : i32
    return %arg0, %c0_i32 : i32, i32
  }
}

</mosaic_0001>

<bundles_post_ra>
// kernel: tpu_custom_call.1
= control target key start
LH: loop header
LB: loop body
LE: loop exit
PB: predicated region body
PF: predicated region fallthrough
CT: control target
= control target key end

     0   :  { %vm85_vm0 = vcmask 1043456   ;;  %vm4349_vm1 = vmmov 1   ;;  %v4350_v7 = vmov 0.0   ;;  %vm66_vm3 = vcmask 228352   ;;  %s5944_s0 = inlined_call_operand.vmem [shape: f32[2,28,28], index: 0, kind: input, shape index: {}]   ;;  %s5945_s1 = inlined_call_operand.vmem [shape: f32[5,28,240], index: 1, kind: input, shape index: {}]   ;;  %s5946_s2 = inlined_call_operand.vmem [shape: f32[1,240], index: 2, kind: input, shape index: {}]   ;;  %s5947_s3 = inlined_call_operand.vmem [shape: f32[240,120], index: 3, kind: input, shape index: {}]   ;;  %s5948_s4 = inlined_call_operand.vmem [shape: f32[240,120], index: 4, kind: input, shape index: {}]   ;;  %s5949_s5 = inlined_call_operand.vmem [shape: f32[2,24,48], index: 5, kind: input, shape index: {}]   ;;  %s5950_s6 = inlined_call_operand.vmem [shape: f32[5,120,160], index: 6, kind: input, shape index: {}]   ;;  %s5951_s7 = inlined_call_operand.vmem [shape: f32[1,160], index: 7, kind: input, shape index: {}]   ;;  %s5952_s8 = inlined_call_operand.vmem [shape: f32[160,80], index: 8, kind: input, shape index: {}]   ;;  %s5953_s9 = inlined_call_operand.vmem [shape: f32[160,80], index: 9, kind: input, shape index: {}]   ;;  %s5954_s10 = inlined_call_operand.vmem [shape: f32[4,2,2,16], index: 10, kind: input, shape index: {}]   ;;  %s5955_s11 = inlined_call_operand.vmem [shape: f32[4,80,64], index: 11, kind: input, shape index: {}]   ;;  %s5956_s12 = inlined_call_operand.vmem [shape: f32[1,64], index: 12, kind: input, shape index: {}]   ;;  %s5957_s13 = inlined_call_operand.vmem [shape: f32[64,128], index: 13, kind: input, shape index: {}]   ;;  %s5958_s14 = inlined_call_operand.vmem [shape: f32[1,128], index: 14, kind: input, shape index: {}]   ;;  %s5959_s15 = inlined_call_operand.hbm [shape: f32[2,10], index: 15, kind: output, shape index: {}]  }
   0x1   :  { %v3201_v0 = vld [vmem:[%s5945_s1 + $0x48] sm:$0xff]  ;;  %v3203_v1 = vld [vmem:[%s5945_s1 + $0x58] sm:$0xff]  ;;  %v3200_v2 = vld [vmem:[%s5945_s1 + $0x40] sm:$0xff]  ;;  %319 = vmatprep.mubr.f32.mxu0 %v4350_v7  ;;  %156 = vmatprep.mubr.f32.mxu1 %v4350_v7  ;;  %v4351_v48 = vmov 0.0|0.0  }
   0x2   :  { %v3785_v3 = vpack.c.bf16 %v3203_v1, %v3201_v0  ;;  %v3202_v4 = vld [vmem:[%s5945_s1 + $0x50] sm:$0xff]  ;;  %vm4446_vm2 = vmpackc.low %vm85_vm0, %vm4349_vm1  ;;  %v3205_v6 = vld [vmem:[%s5945_s1 + $0x68] sm:$0xff] }
   0x3   :  { %v3787_v8 = vpack.c.bf16 %v3202_v4, %v3200_v2  ;;  %v3207_v9 = vld [vmem:[%s5945_s1 + $0x78] sm:$0xf]  ;;  %v3204_v10 = vld [vmem:[%s5945_s1 + $0x60] sm:$0xff]  ;;  %v3206_v11 = vld [vmem:[%s5945_s1 + $0x70] sm:$0xf] }
   0x4   :  { %3786 = vmatprep.subr.bf16.mxu0 %v3785_v3  ;;  %v3789_v12 = vpack.c.bf16 %v3207_v9, %v3205_v6  ;;  %v3217_v13 = vld [vmem:[%s5945_s1 + $0x88] sm:$0xff]  ;;  %v3792_v14 = vpack.c.bf16 %v3206_v11, %v3204_v10  ;;  %v3219_v15 = vld [vmem:[%s5945_s1 + $0x98] sm:$0xff]  ;;  %v3216_v17 = vld [vmem:[%s5945_s1 + $0x80] sm:$0xff] }
   0x5   :  { %3788 = vmatpush1.bf16.msra.mxu0 %v3787_v8  ;;  %v3795_v16 = vpack.c.bf16 %v3219_v15, %v3217_v13  ;;  %v3218_v18 = vld [vmem:[%s5945_s1 + $0x90] sm:$0xff]  ;;  %v3221_v19 = vld [vmem:[%s5945_s1 + $0xa8] sm:$0xff]  ;;  %v3223_v20 = vld [vmem:[%s5945_s1 + $0xb8] sm:$0xf] }
   0x6   :  { %3791 = vmatprep.subr.msk.bf16.mxu0 %vm4446_vm2, %v3789_v12  ;;  %v216_v21 = vld [vmem:[%s5944_s0 + $0x1] sm:$0xff]  ;;  %v3797_v22 = vpack.c.bf16 %v3218_v18, %v3216_v17  ;;  %v3799_v23 = vpack.c.bf16 %v3223_v20, %v3221_v19  ;;  %v3222_v25 = vld [vmem:[%s5945_s1 + $0xb0] sm:$0xf]  ;;  %v3235_v27 = vld [vmem:[%s5945_s1 + $0xd8] sm:$0xff] }
   0x7   :  { %v3220_v24 = vld [vmem:[%s5945_s1 + $0xa0] sm:$0xff]  ;;  %v3233_v26 = vld [vmem:[%s5945_s1 + $0xc8] sm:$0xff]  ;;  %v61_v32 = vld [vmem:[%s5945_s1 + $0x18] sm:$0xff] }
   0x8   :  { %v217_v28 = vld [vmem:[%s5944_s0 + $0x9] sm:$0xff]  ;;  %v3802_v29 = vpack.c.bf16 %v3222_v25, %v3220_v24  ;;  %v3805_v30 = vpack.c.bf16 %v3235_v27, %v3233_v26  ;;  %v58_v33 = vld [vmem:[%s5945_s1] sm:$0xff]  ;;  %v218_v34 = vld [vmem:[%s5944_s0 + $0x11] sm:$0xff] }
   0x9   :  { %3794 = vmatpush1.bf16.msk.msra.mxu0 %vm4446_vm2, %v3792_v14  ;;  %v59_v31 = vld [vmem:[%s5945_s1 + $0x8] sm:$0xff]  ;;  %v60_v36 = vld [vmem:[%s5945_s1 + $0x10] sm:$0xff]  ;;  %v65_v39 = vld [vmem:[%s5945_s1 + $0x38] sm:$0xf] }
   0xa   :  { %3796 = vmatprep.subr.bf16.mxu0 %v3795_v16  ;;  %v3775_v35 = vpack.c.bf16 %v61_v32, %v59_v31  ;;  %v3777_v37 = vpack.c.bf16 %v60_v36, %v58_v33  ;;  %v63_v38 = vld [vmem:[%s5945_s1 + $0x28] sm:$0xff]  ;;  %v62_v41 = vld [vmem:[%s5945_s1 + $0x20] sm:$0xff]  ;;  %v64_v42 = vld [vmem:[%s5945_s1 + $0x30] sm:$0xf] }
   0xb   :  { %v3779_v40 = vpack.c.bf16 %v65_v39, %v63_v38  ;;  %v219_v43 = vld [vmem:[%s5944_s0 + $0x21] sm:$0xff]  ;;  %v3782_v44 = vpack.c.bf16 %v64_v42, %v62_v41  ;;  %v220_v47 = vld [vmem:[%s5944_s0 + $0x29] sm:$0xff]  ;;  %v827_v52 = vld [vmem:[%s5947_s3 + $0x18] sm:$0xff] }
   0xc   :  { %3210 = vmatmul.mubr.msk.f32.vlgmr.msra.gmra.mrb[0].mxu0 %vm66_vm3, %v216_v21  ;;  %3776 = vmatprep.subr.bf16.mxu1 %v3775_v35  ;;  %v52_v45 = vld [vmem:[%s5944_s0] sm:$0xff]  ;;  %v825_v49 = vld [vmem:[%s5947_s3 + $0x8] sm:$0xff]  ;;  %v826_v51 = vld [vmem:[%s5947_s3 + $0x10] sm:$0xff] }
   0xd   :  { %325 = vmatprep.mubr.f32.mxu0 %v4350_v7  ;;  %3798 = vmatpush1.bf16.msra.mxu0 %v3797_v22  ;;  %v824_v46 = vld [vmem:[%s5947_s3] sm:$0xff]  ;;  %v53_v53 = vld [vmem:[%s5944_s0 + $0x8] sm:$0xff]  ;;  %v221_v54 = vld [vmem:[%s5944_s0 + $0x31] sm:$0xff]  ;;  %v3829_v55 = vpack.c.bf16 %v827_v52, %v826_v51 }
   0xe   :  { %3801 = vmatprep.subr.msk.bf16.mxu0 %vm4446_vm2, %v3799_v23  ;;  %3778 = vmatpush1.bf16.msra.mxu1 %v3777_v37  ;;  %v3826_v50 = vpack.c.bf16 %v825_v49, %v824_v46  ;;  %v3232_v56 = vld [vmem:[%s5945_s1 + $0xc0] sm:$0xff]  ;;  %v3234_v57 = vld [vmem:[%s5945_s1 + $0xd0] sm:$0xff]  ;;  %v3237_v58 = vld [vmem:[%s5945_s1 + $0xe8] sm:$0xff] }
   0xf   :  { %3781 = vmatprep.subr.msk.bf16.mxu1 %vm4446_vm2, %v3779_v40  ;;  %v3239_v59 = vld [vmem:[%s5945_s1 + $0xf8] sm:$0xf]  ;;  %v828_v60 = vld [vmem:[%s5947_s3 + $0x20] sm:$0xff]  ;;  %v829_v61 = vld [vmem:[%s5947_s3 + $0x28] sm:$0xff]  ;;  %v3807_v0 = vpack.c.bf16 %v3234_v57, %v3232_v56 }
  0x10   :  { %3211 = vmatmul.mubr.msk.f32.gmra.mrb[2].mxu0 %vm66_vm3, %v217_v28  ;;  %v54_v62 = vld [vmem:[%s5944_s0 + $0x10] sm:$0xff]  ;;  %v368_v63 = vld [vmem:[%s5944_s0 + $0x2] sm:$0xff] }
  0x11   :  { %331 = vmatprep.mubr.f32.mxu0 %v4350_v7  ;;  %3804 = vmatpush1.bf16.msk.msra.mxu0 %vm4446_vm2, %v3802_v29 }
  0x12   :  { %3806 = vmatprep.subr.bf16.mxu0 %v3805_v30  ;;  %3784 = vmatpush1.bf16.msk.msra.mxu1 %vm4446_vm2, %v3782_v44 }
  0x13   :  { %3825 = vmatprep.subr.bf16.mxu1 %v4351_v48 }
  0x14   :  { %3212 = vmatmul.mubr.msk.f32.gmra.mrb[4].mxu0 %vm66_vm3, %v218_v34 }
  0x15   :  { %337 = vmatprep.mubr.f32.mxu0 %v4350_v7  ;;  %3194 = vmatmul.mubr.msk.f32.vlgmr.msra.gmra.mrb[0].mxu1 %vm66_vm3, %v52_v45 }
  0x16   :  { %162 = vmatprep.mubr.f32.mxu1 %v4350_v7  ;;  %3827 = vmatpush1.bf16.msra.mxu1 %v3826_v50 }
  0x17   :  { %3828 = vmatprep.subr.bf16.mxu1 %v4351_v48 }
  0x18   :  { %3213 = vmatmul.mubr.msk.f32.gmra.mrb[6].mxu0 %vm66_vm3, %v219_v43 }
  0x19   :  { %343 = vmatprep.mubr.f32.mxu0 %v4350_v7  ;;  %3195 = vmatmul.mubr.msk.f32.gmra.mrb[2].mxu1 %vm66_vm3, %v53_v53 }
  0x1a   :  { %168 = vmatprep.mubr.f32.mxu1 %v4350_v7  ;;  %3830 = vmatpush1.bf16.msra.mxu1 %v3829_v55 }
  0x1c   :  { %3214 = vmatmul.mubr.msk.f32.gmra.mrb[8].mxu0 %vm66_vm3, %v220_v47 }
  0x1d   :  { %349 = vmatprep.mubr.f32.mxu0 %v4350_v7 }
  0x20   :  { %3215 = vmatmul.mubr.msk.f32.gmra.mrb[10].mxu0 %vm66_vm3, %v221_v54 }
  0x21   :  { %471 = vmatprep.mubr.f32.mxu0 %v4350_v7 }
  0x22   :  { %20 = vsyncpa [#allocation4], 0  ;;  %v3809_v1 = vpack.c.bf16 %v3239_v59, %v3237_v58  ;;  %v3236_v2 = vld [vmem:[%s5945_s1 + $0xe0] sm:$0xff]  ;;  %v3238_v3 = vld [vmem:[%s5945_s1 + $0xf0] sm:$0xf]  ;;  %3831 = vmatprep.subr.bf16.mxu1 %v4351_v48  ;;  %v3832_v6 = vpack.c.bf16 %v829_v61, %v828_v60  ;;  %3196 = vmatmul.mubr.msk.f32.gmra.mrb[4].mxu1 %vm66_vm3, %v54_v62  ;;  %vm854_vm4 = vcmask 916480  }
  0x23   :  { %v3249_v4 = vld [vmem:[%s5945_s1 + $0x108] sm:$0xff]  ;;  %v3251_v8 = vld [vmem:[%s5945_s1 + $0x118] sm:$0xff]  ;;  %v830_v9 = vld [vmem:[%s5947_s3 + $0x30] sm:$0xff]  ;;  %174 = vmatprep.mubr.f32.mxu1 %v4350_v7  ;;  %v3812_v13 = vpack.c.bf16 %v3238_v3, %v3236_v2  ;;  %vm4352_vm5 = vmmov 0   ;;  %vm1102_vm6 = vcmask 392192   ;;  %vm1302_vm7 = vcmask 982016  }
  0x24   :  { %v831_v10 = vld [vmem:[%s5947_s3 + $0x38] sm:$0xff]  ;;  %3226 = vmatmul.mubr.msk.f32.vlgmr.msra.gmra.mrb[0].mxu0 %vm66_vm3, %v368_v63  ;;  %v55_v11 = vld [vmem:[%s5944_s0 + $0x20] sm:$0xff]  ;;  %v369_v12 = vld [vmem:[%s5944_s0 + $0xa] sm:$0xff]  ;;  %v3815_v14 = vpack.c.bf16 %v3251_v8, %v3249_v4  ;;  %3833 = vmatpush1.bf16.msra.mxu1 %v3832_v6  ;;  %vm1304_vm8 = vcmask 977920   ;;  %vm1939_vm9 = vcmask 261120   ;;  %vm2120_vm10 = vcmask 130048  }
  0x25   :  { %477 = vmatprep.mubr.f32.mxu0 %v4350_v7  ;;  %3808 = vmatpush1.bf16.msra.mxu0 %v3807_v0  ;;  %v3835_v15 = vpack.c.bf16 %v831_v10, %v830_v9  ;;  %v832_v16 = vld [vmem:[%s5947_s3 + $0x40] sm:$0xff]  ;;  %v833_v17 = vld [vmem:[%s5947_s3 + $0x48] sm:$0xff]  ;;  %v370_v19 = vld [vmem:[%s5944_s0 + $0x12] sm:$0xff]  ;;  %vm2281_vm11 = vcmask 654336   ;;  %vm3089_vm12 = vcmask 523264   ;;  %vm3163_vm13 = vcmask 1041408  }
  0x26   :  { %3811 = vmatprep.subr.msk.bf16.mxu0 %vm4446_vm2, %v3809_v1  ;;  %3197 = vmatmul.mubr.msk.f32.gmra.mrb[6].mxu1 %vm66_vm3, %v55_v11  ;;  %v56_v18 = vld [vmem:[%s5944_s0 + $0x28] sm:$0xff]  ;;  %v3838_v20 = vpack.c.bf16 %v833_v17, %v832_v16  ;;  %v834_v21 = vld [vmem:[%s5947_s3 + $0x50] sm:$0xff]  ;;  %v835_v22 = vld [vmem:[%s5947_s3 + $0x58] sm:$0xff]  ;;  %vm3176_vm14 = vcmask 74752  }
  0x27   :  { %3834 = vmatprep.subr.bf16.mxu1 %v4351_v48  ;;  %180 = vmatprep.mubr.f32.mxu1 %v4350_v7  ;;  %v57_v23 = vld [vmem:[%s5944_s0 + $0x30] sm:$0xff]  ;;  %v371_v24 = vld [vmem:[%s5944_s0 + $0x22] sm:$0xff]  ;;  %v3841_v25 = vpack.c.bf16 %v835_v22, %v834_v21  ;;  %v839_v31 = vld [vmem:[%s5947_s3 + $0x78] sm:$0xff] }
  0x28   :  { %3227 = vmatmul.mubr.msk.f32.gmra.mrb[2].mxu0 %vm66_vm3, %v369_v12  ;;  %3836 = vmatpush1.bf16.msra.mxu1 %v3835_v15  ;;  %v836_v26 = vld [vmem:[%s5947_s3 + $0x60] sm:$0xff]  ;;  %v837_v27 = vld [vmem:[%s5947_s3 + $0x68] sm:$0xff]  ;;  %v838_v30 = vld [vmem:[%s5947_s3 + $0x70] sm:$0xff] }
  0x29   :  { %483 = vmatprep.mubr.f32.mxu0 %v4350_v7  ;;  %3814 = vmatpush1.bf16.msk.msra.mxu0 %vm4446_vm2, %v3812_v13  ;;  %v372_v28 = vld [vmem:[%s5944_s0 + $0x2a] sm:$0xff]  ;;  %v3844_v29 = vpack.c.bf16 %v837_v27, %v836_v26  ;;  %v373_v32 = vld [vmem:[%s5944_s0 + $0x32] sm:$0xff]  ;;  %v3248_v33 = vld [vmem:[%s5945_s1 + $0x100] sm:$0xff]  ;;  %v3847_v36 = vpack.c.bf16 %v839_v31, %v838_v30  ;;  %v194_v26 = vlaneseq }
  0x2a   :  { %3816 = vmatprep.subr.bf16.mxu0 %v3815_v14  ;;  %3198 = vmatmul.mubr.msk.f32.gmra.mrb[8].mxu1 %vm66_vm3, %v56_v18  ;;  %v3250_v34 = vld [vmem:[%s5945_s1 + $0x110] sm:$0xff]  ;;  %v3253_v35 = vld [vmem:[%s5945_s1 + $0x128] sm:$0xff]  ;;  %v3255_v37 = vld [vmem:[%s5945_s1 + $0x138] sm:$0xf] }
  0x2b   :  { %3837 = vmatprep.subr.bf16.mxu1 %v4351_v48  ;;  %186 = vmatprep.mubr.f32.mxu1 %v4350_v7  ;;  %v840_v38 = vld [vmem:[%s5947_s3 + $0x80] sm:$0xff]  ;;  %v841_v39 = vld [vmem:[%s5947_s3 + $0x88] sm:$0xff]  ;;  %v3817_v41 = vpack.c.bf16 %v3250_v34, %v3248_v33  ;;  %v3819_v42 = vpack.c.bf16 %v3255_v37, %v3253_v35  ;;  %v3254_v44 = vld [vmem:[%s5945_s1 + $0x130] sm:$0xf]  ;;  %v4839_v27 = vshrl.u32 %v194_v26, 7 }
  0x2c   :  { %3228 = vmatmul.mubr.msk.f32.gmra.mrb[4].mxu0 %vm66_vm3, %v370_v19  ;;  %3839 = vmatpush1.bf16.msra.mxu1 %v3838_v20  ;;  %v520_v40 = vld [vmem:[%s5944_s0 + $0x3] sm:$0xff]  ;;  %v3850_v45 = vpack.c.bf16 %v841_v39, %v840_v38  ;;  %v842_v46 = vld [vmem:[%s5947_s3 + $0x90] sm:$0xff]  ;;  %v843_v47 = vld [vmem:[%s5947_s3 + $0x98] sm:$0xff] }
  0x2d   :  { %489 = vmatprep.mubr.f32.mxu0 %v4350_v7  ;;  %3840 = vmatprep.subr.bf16.mxu1 %v4351_v48  ;;  %v3252_v43 = vld [vmem:[%s5945_s1 + $0x120] sm:$0xff]  ;;  %v521_v49 = vld [vmem:[%s5944_s0 + $0xb] sm:$0xff]  ;;  %v3853_v51 = vpack.c.bf16 %v843_v47, %v842_v46  ;;  %v522_v54 = vld [vmem:[%s5944_s0 + $0x13] sm:$0xff]  ;;  %v200_v30 = vsub.s32 1, %v4839_v27 }
  0x2e   :  { %3199 = vmatmul.mubr.msk.f32.gmra.mrb[10].mxu1 %vm66_vm3, %v57_v23  ;;  %v3822_v50 = vpack.c.bf16 %v3254_v44, %v3252_v43  ;;  %v844_v52 = vld [vmem:[%s5947_s3 + $0xa0] sm:$0xff]  ;;  %v845_v53 = vld [vmem:[%s5947_s3 + $0xa8] sm:$0xff]  ;;  %v846_v56 = vld [vmem:[%s5947_s3 + $0xb0] sm:$0xff] }
  0x2f   :  { %v3856_v55 = vpack.c.bf16 %v845_v53, %v844_v52  ;;  %v847_v57 = vld [vmem:[%s5947_s3 + $0xb8] sm:$0xff]  ;;  %v523_v5 = vld [vmem:[%s5944_s0 + $0x23] sm:$0xff]  ;;  %v524_v61 = vld [vmem:[%s5944_s0 + $0x2b] sm:$0xff] }
  0x30   :  { %3229 = vmatmul.mubr.msk.f32.gmra.mrb[6].mxu0 %vm66_vm3, %v371_v24  ;;  %3842 = vmatpush1.bf16.msra.mxu1 %v3841_v25  ;;  %v3859_v58 = vpack.c.bf16 %v847_v57, %v846_v56  ;;  %v848_v59 = vld [vmem:[%s5947_s3 + $0xc0] sm:$0xff]  ;;  %v849_v60 = vld [vmem:[%s5947_s3 + $0xc8] sm:$0xff]  ;;  %v525_v63 = vld [vmem:[%s5944_s0 + $0x33] sm:$0xff] }
  0x31   :  { %495 = vmatprep.mubr.f32.mxu0 %v4350_v7  ;;  %3843 = vmatprep.subr.bf16.mxu1 %v4351_v48  ;;  %v3862_v62 = vpack.c.bf16 %v849_v60, %v848_v59  ;;  %v672_v0 = vld [vmem:[%s5944_s0 + $0x4] sm:$0xff]  ;;  %v673_v1 = vld [vmem:[%s5944_s0 + $0xc] sm:$0xff]  ;;  %v674_v2 = vld [vmem:[%s5944_s0 + $0x14] sm:$0xff] }
  0x32   :  { %v675_v3 = vld [vmem:[%s5944_s0 + $0x24] sm:$0xff]  ;;  %v676_v4 = vld [vmem:[%s5944_s0 + $0x2c] sm:$0xff]  ;;  %v677_v6 = vld [vmem:[%s5944_s0 + $0x34] sm:$0xff] }
  0x33   :  { %v850_v8 = vld [vmem:[%s5947_s3 + $0xd0] sm:$0xff]  ;;  %v851_v9 = vld [vmem:[%s5947_s3 + $0xd8] sm:$0xff]  ;;  %v852_v11 = vld [vmem:[%s5947_s3 + $0xe0] sm:$0xff] }
  0x34   :  { %3230 = vmatmul.mubr.msk.f32.gmra.mrb[8].mxu0 %vm66_vm3, %v372_v28  ;;  %3845 = vmatpush1.bf16.msra.mxu1 %v3844_v29  ;;  %v3865_v10 = vpack.c.bf16 %v851_v9, %v850_v8  ;;  %v853_v12 = vld [vmem:[%s5947_s3 + $0xe8] sm:$0xff]  ;;  %v196_v28 = vsub.s32 0, %v4839_v27  ;;  %v51_v29 = vld [vmem:[%s5946_s2] sm:$0x3]  ;;  %v970_v44 = vld [vmem:[%s5948_s4 + $0x10] sm:$0xff] }
  0x35   :  { %501 = vmatprep.mubr.f32.mxu0 %v4350_v7  ;;  %3846 = vmatprep.subr.bf16.mxu1 %v4351_v48  ;;  %v3868_v13 = vpack.c.bf16 %v853_v12, %v852_v11  ;;  %v968_v35 = vld [vmem:[%s5948_s4] sm:$0xff]  ;;  %v981_v26 = vld [vmem:[%s5948_s4 + $0x68] sm:$0xff]  ;;  %v2024_v27 = vld [vmem:[%s5953_s9 + $0x18] sm:$0xff] }
  0x36   :  { %v197_v31 = vrot.slane %v51_v29, %v196_v28  ;;  %v976_v9 = vld [vmem:[%s5948_s4 + $0x40] sm:$0xff] }
  0x38   :  { %3231 = vmatmul.mubr.msk.f32.gmra.mrb[10].mxu0 %vm66_vm3, %v373_v32  ;;  %3848 = vmatpush1.bf16.msra.mxu1 %v3847_v36  ;;  %v201_v32 = vrot.slane %v51_v29, %v200_v30  ;;  %v969_v36 = vld [vmem:[%s5948_s4 + $0x8] sm:$0xff] }
  0x39   :  { %623 = vmatprep.mubr.f32.mxu0 %v4350_v7  ;;  %3849 = vmatprep.subr.bf16.mxu1 %v4351_v48  ;;  %v3871_v43 = vpack.c.bf16 %v969_v36, %v968_v35  ;;  %v985_v35 = vld [vmem:[%s5948_s4 + $0x88] sm:$0xff] }
  0x3c   :  { %3242 = vmatmul.mubr.msk.f32.vlgmr.msra.gmra.mrb[0].mxu0 %vm66_vm3, %v520_v40  ;;  %3851 = vmatpush1.bf16.msra.mxu1 %v3850_v45  ;;  %v971_v45 = vld [vmem:[%s5948_s4 + $0x18] sm:$0xff] }
  0x3d   :  { %629 = vmatprep.mubr.f32.mxu0 %v4350_v7  ;;  %3818 = vmatpush1.bf16.msra.mxu0 %v3817_v41  ;;  %v3874_v53 = vpack.c.bf16 %v971_v45, %v970_v44  ;;  %v990_v44 = vld [vmem:[%s5948_s4 + $0xb0] sm:$0xff]  ;;  %v991_v45 = vld [vmem:[%s5948_s4 + $0xb8] sm:$0xff] }
  0x3e   :  { %3821 = vmatprep.subr.msk.bf16.mxu0 %vm4446_vm2, %v3819_v42  ;;  %3852 = vmatprep.subr.bf16.mxu1 %v4351_v48 }
  0x40   :  { %3243 = vmatmul.mubr.msk.f32.gmra.mrb[2].mxu0 %vm66_vm3, %v521_v49  ;;  %3854 = vmatpush1.bf16.msra.mxu1 %v3853_v51 }
  0x41   :  { %635 = vmatprep.mubr.f32.mxu0 %v4350_v7  ;;  %3824 = vmatpush1.bf16.msk.msra.mxu0 %vm4446_vm2, %v3822_v50 }
  0x42   :  { %3915 = vmatprep.subr.bf16.mxu0 %v4351_v48  ;;  %3855 = vmatprep.subr.bf16.mxu1 %v4351_v48 }
  0x44   :  { %3244 = vmatmul.mubr.msk.f32.gmra.mrb[4].mxu0 %vm66_vm3, %v522_v54  ;;  %3857 = vmatpush1.bf16.msra.mxu1 %v3856_v55  ;;  %v972_v54 = vld [vmem:[%s5948_s4 + $0x20] sm:$0xff]  ;;  %v973_v55 = vld [vmem:[%s5948_s4 + $0x28] sm:$0xff] }
  0x45   :  { %641 = vmatprep.mubr.f32.mxu0 %v4350_v7  ;;  %3858 = vmatprep.subr.bf16.mxu1 %v4351_v48 }
  0x48   :  { %3245 = vmatmul.mubr.msk.f32.gmra.mrb[6].mxu0 %vm66_vm3, %v523_v5  ;;  %3860 = vmatpush1.bf16.msra.mxu1 %v3859_v58 }
  0x49   :  { %647 = vmatprep.mubr.f32.mxu0 %v4350_v7  ;;  %3861 = vmatprep.subr.bf16.mxu1 %v4351_v48 }
  0x4c   :  { %3246 = vmatmul.mubr.msk.f32.gmra.mrb[8].mxu0 %vm66_vm3, %v524_v61  ;;  %3863 = vmatpush1.bf16.msra.mxu1 %v3862_v62  ;;  %v3877_v61 = vpack.c.bf16 %v973_v55, %v972_v54  ;;  %v974_v62 = vld [vmem:[%s5948_s4 + $0x30] sm:$0xff]  ;;  %v995_v54 = vld [vmem:[%s5948_s4 + $0xd8] sm:$0xff] }
  0x4d   :  { %653 = vmatprep.mubr.f32.mxu0 %v4350_v7  ;;  %3864 = vmatprep.subr.bf16.mxu1 %v4351_v48 }
  0x50   :  { %3247 = vmatmul.mubr.msk.f32.gmra.mrb[10].mxu0 %vm66_vm3, %v525_v63  ;;  %3866 = vmatpush1.bf16.msra.mxu1 %v3865_v10  ;;  %v975_v63 = vld [vmem:[%s5948_s4 + $0x38] sm:$0xff]  ;;  %v977_v10 = vld [vmem:[%s5948_s4 + $0x48] sm:$0xff] }
  0x51   :  { %775 = vmatprep.mubr.f32.mxu0 %v4350_v7  ;;  %3867 = vmatprep.subr.bf16.mxu1 %v4351_v48  ;;  %v3880_v8 = vpack.c.bf16 %v975_v63, %v974_v62 }
  0x54   :  { %3258 = vmatmul.mubr.msk.f32.vlgmr.msra.gmra.mrb[0].mxu0 %vm66_vm3, %v672_v0  ;;  %3869 = vmatpush1.bf16.msra.mxu1 %v3868_v13 }
  0x55   :  { %781 = vmatprep.mubr.f32.mxu0 %v4350_v7  ;;  %3870 = vmatprep.subr.bf16.mxu1 %v4351_v48 }
  0x58   :  { %3259 = vmatmul.mubr.msk.f32.gmra.mrb[2].mxu0 %vm66_vm3, %v673_v1 }
  0x59   :  { %787 = vmatprep.mubr.f32.mxu0 %v4350_v7 }
  0x5c   :  { %3260 = vmatmul.mubr.msk.f32.gmra.mrb[4].mxu0 %vm66_vm3, %v674_v2 }
  0x5d   :  { %793 = vmatprep.mubr.f32.mxu0 %v4350_v7 }
  0x60   :  { %3261 = vmatmul.mubr.msk.f32.gmra.mrb[6].mxu0 %vm66_vm3, %v675_v3 }
  0x61   :  { %799 = vmatprep.mubr.f32.mxu0 %v4350_v7 }
  0x64   :  { %3262 = vmatmul.mubr.msk.f32.gmra.mrb[8].mxu0 %vm66_vm3, %v676_v4 }
  0x65   :  { %805 = vmatprep.mubr.f32.mxu0 %v4350_v7 }
  0x68   :  { %3263 = vmatmul.mubr.msk.f32.gmra.mrb[10].mxu0 %vm66_vm3, %v677_v6 }
  0x69   :  { %3578 = vmatprep.mubr.msk.f32.mxu0 %vm4352_vm5, %v4350_v7 }
  0xe8   :  { %v158_v14 = vpop.f32.mrb[0].mxu1 }
  0xe9   :  { %v160_v15 = vpop.f32.mrb[1].mxu1  ;;  %v204_v33 = vadd.f32 %v197_v31, %v158_v14 }
  0xea   :  { %v205_v34 = vadd.f32 %v201_v32, %v160_v15 }
  0xec   :  { %v164_v16 = vpop.f32.mrb[2].mxu1 }
  0xed   :  { %v166_v17 = vpop.f32.mrb[3].mxu1  ;;  %v206_v40 = vadd.f32 %v197_v31, %v164_v16 }
  0xee   :  { %v207_v42 = vadd.f32 %v201_v32, %v166_v17  ;;  %v3883_v17 = vpack.c.bf16 %v977_v10, %v976_v9 }
  0xf5   :  { %v170_v18 = vpop.f32.mrb[4].mxu1 }
  0xf6   :  { %v172_v19 = vpop.f32.mrb[5].mxu1  ;;  %v208_v50 = vadd.f32 %v197_v31, %v170_v18  ;;  %v978_v18 = vld [vmem:[%s5948_s4 + $0x50] sm:$0xff] }
  0xf7   :  { %v209_v52 = vadd.f32 %v201_v32, %v172_v19  ;;  %v979_v19 = vld [vmem:[%s5948_s4 + $0x58] sm:$0xff] }
  0xf9   :  { %v176_v20 = vpop.f32.mrb[6].mxu1 }
  0xfa   :  { %v178_v21 = vpop.f32.mrb[7].mxu1  ;;  %v210_v58 = vadd.f32 %v197_v31, %v176_v20 }
  0xfb   :  { %v211_v60 = vadd.f32 %v201_v32, %v178_v21 }
  0xfd   :  { %v182_v22 = vpop.f32.mrb[8].mxu1 }
  0xfe   :  { %v184_v23 = vpop.f32.mrb[9].mxu1  ;;  %v212_v3 = vadd.f32 %v197_v31, %v182_v22 }
  0xff   :  { %v213_v6 = vadd.f32 %v201_v32, %v184_v23 }
 0x101   :  { %v4835_v24 = vpop.f32.mrb[10].mxu1 }
 0x102   :  { %v4837_v25 = vpop.f32.mrb[11].mxu1  ;;  %v214_v14 = vadd.f32 %v197_v31, %v4835_v24  ;;  %v3886_v24 = vpack.c.bf16 %v979_v19, %v978_v18  ;;  %v982_v31 = vld [vmem:[%s5948_s4 + $0x70] sm:$0xff] }
 0x103   :  { %v215_v16 = vadd.f32 %v201_v32, %v4837_v25  ;;  %v980_v25 = vld [vmem:[%s5948_s4 + $0x60] sm:$0xff]  ;;  %v983_v32 = vld [vmem:[%s5948_s4 + $0x78] sm:$0xff] }
 0x104   :  { %v3889_v29 = vpack.c.bf16 %v981_v26, %v980_v25 }
 0x127   :  { %v777_v37 = vpop.f32.mrb[0].mxu0 }
 0x128   :  { %v4856_v38 = vadd.f32 %v777_v37, %v204_v33  ;;  %v779_v39 = vpop.f32.mrb[1].mxu0  ;;  %v3892_v33 = vpack.c.bf16 %v983_v32, %v982_v31  ;;  %v986_v37 = vld [vmem:[%s5948_s4 + $0x90] sm:$0xff] }
 0x129   :  { %v4858_v41 = vadd.f32 %v779_v39, %v205_v34  ;;  %v984_v34 = vld [vmem:[%s5948_s4 + $0x80] sm:$0xff]  ;;  %v987_v39 = vld [vmem:[%s5948_s4 + $0x98] sm:$0xff] }
 0x12a   :  { %v3895_v36 = vpack.c.bf16 %v985_v35, %v984_v34  ;;  %v1099_v35 = vld [vmem:[%s5949_s5] sm:$0xff] }
 0x12b   :  { %v783_v46 = vpop.f32.mrb[2].mxu0  ;;  %3264 = vmatprep.mubr.msk.f32.mxu1 %vm854_vm4, %v4858_v41 }
 0x12c   :  { %v4868_v47 = vadd.f32 %v783_v46, %v206_v40  ;;  %v785_v49 = vpop.f32.mrb[3].mxu0  ;;  %938 = vmatmul.mubr.f32.vlgmr.msra.gmra.mrb[12].mxu1 %v4856_v38  ;;  %v3898_v40 = vpack.c.bf16 %v987_v39, %v986_v37  ;;  %v3904_v46 = vpack.c.bf16 %v991_v45, %v990_v44  ;;  %v1101_v37 = vld [vmem:[%s5949_s5 + $0x10] sm:$0xff]  ;;  %v3279_v39 = vld [vmem:[%s5949_s5 + $0x18] sm:$0xff]  ;;  %v1315_v45 = vld [vmem:[%s5950_s6 + $0x20] sm:$0xff] }
 0x12d   :  { %v4871_v51 = vadd.f32 %v785_v49, %v207_v42  ;;  %3872 = vmatpush1.bf16.msra.mxu1 %v3871_v43  ;;  %v989_v42 = vld [vmem:[%s5948_s4 + $0xa8] sm:$0xff]  ;;  %v992_v49 = vld [vmem:[%s5948_s4 + $0xc0] sm:$0xff] }
 0x12e   :  { %3873 = vmatprep.subr.bf16.mxu1 %v4351_v48 }
 0x12f   :  { %v789_v56 = vpop.f32.mrb[4].mxu0  ;;  %3265 = vmatprep.mubr.msk.f32.mxu1 %vm854_vm4, %v4871_v51 }
 0x130   :  { %v4882_v57 = vadd.f32 %v789_v56, %v208_v50  ;;  %v791_v5 = vpop.f32.mrb[5].mxu0  ;;  %943 = vmatmul.mubr.f32.gmra.mrb[14].mxu1 %v4868_v47  ;;  %v993_v50 = vld [vmem:[%s5948_s4 + $0xc8] sm:$0xff]  ;;  %v996_v56 = vld [vmem:[%s5948_s4 + $0xe0] sm:$0xff] }
 0x131   :  { %v4885_v59 = vadd.f32 %v791_v5, %v209_v52  ;;  %3875 = vmatpush1.bf16.msra.mxu1 %v3874_v53  ;;  %v3907_v52 = vpack.c.bf16 %v993_v50, %v992_v49  ;;  %v994_v53 = vld [vmem:[%s5948_s4 + $0xd0] sm:$0xff]  ;;  %v997_v5 = vld [vmem:[%s5948_s4 + $0xe8] sm:$0xff] }
 0x132   :  { %3876 = vmatprep.subr.bf16.mxu1 %v4351_v48  ;;  %v3910_v55 = vpack.c.bf16 %v995_v54, %v994_v53  ;;  %v1320_v50 = vld [vmem:[%s5950_s6 + $0x48] sm:$0xff]  ;;  %v1319_v54 = vld [vmem:[%s5950_s6 + $0x40] sm:$0xff] }
 0x133   :  { %v795_v0 = vpop.f32.mrb[6].mxu0  ;;  %3266 = vmatprep.mubr.msk.f32.mxu1 %vm854_vm4, %v4885_v59 }
 0x134   :  { %v4896_v1 = vadd.f32 %v795_v0, %v210_v58  ;;  %v797_v2 = vpop.f32.mrb[7].mxu0  ;;  %948 = vmatmul.mubr.f32.gmra.mrb[16].mxu1 %v4882_v57  ;;  %v3913_v58 = vpack.c.bf16 %v997_v5, %v996_v56  ;;  %v1324_v5 = vld [vmem:[%s5950_s6 + $0x68] sm:$0xff] }
 0x135   :  { %v4899_v4 = vadd.f32 %v797_v2, %v211_v60  ;;  %3878 = vmatpush1.bf16.msra.mxu1 %v3877_v61 }
 0x136   :  { %3879 = vmatprep.subr.bf16.mxu1 %v4351_v48 }
 0x137   :  { %v801_v11 = vpop.f32.mrb[8].mxu0  ;;  %3267 = vmatprep.mubr.msk.f32.mxu1 %vm854_vm4, %v4899_v4 }
 0x138   :  { %v4910_v12 = vadd.f32 %v801_v11, %v212_v3  ;;  %v803_v13 = vpop.f32.mrb[9].mxu0  ;;  %953 = vmatmul.mubr.f32.gmra.mrb[18].mxu1 %v4896_v1 }
 0x139   :  { %v4914_v15 = vadd.f32 %v803_v13, %v213_v6  ;;  %3881 = vmatpush1.bf16.msra.mxu1 %v3880_v8 }
 0x13a   :  { %3882 = vmatprep.subr.bf16.mxu1 %v4351_v48 }
 0x13b   :  { %v807_v20 = vpop.f32.mrb[10].mxu0  ;;  %3268 = vmatprep.mubr.msk.f32.mxu1 %vm854_vm4, %v4914_v15 }
 0x13c   :  { %v4926_v21 = vadd.f32 %v807_v20, %v214_v14  ;;  %v809_v22 = vpop.f32.mrb[11].mxu0  ;;  %958 = vmatmul.mubr.f32.gmra.mrb[20].mxu1 %v4910_v12 }
 0x13d   :  { %v4252_v23 = vadd.f32 %v809_v22, %v215_v16  ;;  %3884 = vmatpush1.bf16.msra.mxu1 %v3883_v17 }
 0x13e   :  { %3885 = vmatprep.subr.bf16.mxu1 %v4351_v48 }
 0x13f   :  { %3269 = vmatprep.mubr.msk.f32.mxu1 %vm854_vm4, %v4252_v23 }
 0x140   :  { %963 = vmatmul.mubr.f32.gmra.mrb[22].mxu1 %v4926_v21 }
 0x141   :  { %3887 = vmatpush1.bf16.msra.mxu1 %v3886_v24  ;;  %3270 = vmatprep.mubr.msk.f32.mxu1 %vm854_vm4, %v4858_v41  ;;  %v988_v41 = vld [vmem:[%s5948_s4 + $0xa0] sm:$0xff] }
 0x142   :  { %3888 = vmatprep.subr.bf16.mxu1 %v4351_v48  ;;  %v3901_v43 = vpack.c.bf16 %v989_v42, %v988_v41  ;;  %v3281_v41 = vld [vmem:[%s5949_s5 + $0x28] sm:$0xff] }
 0x143   :  { %v1316_v42 = vld [vmem:[%s5950_s6 + $0x28] sm:$0xff] }
 0x145   :  { %3890 = vmatpush1.bf16.msra.mxu1 %v3889_v29 }
 0x146   :  { %3891 = vmatprep.subr.bf16.mxu1 %v4351_v48 }
 0x149   :  { %3893 = vmatpush1.bf16.msra.mxu1 %v3892_v33 }
 0x14a   :  { %3894 = vmatprep.subr.bf16.mxu1 %v4351_v48 }
 0x14d   :  { %3896 = vmatpush1.bf16.msra.mxu1 %v3895_v36  ;;  %v1100_v36 = vld [vmem:[%s5949_s5 + $0x8] sm:$0xff] }
 0x14e   :  { %3897 = vmatprep.subr.bf16.mxu1 %v4351_v48 }
 0x151   :  { %3899 = vmatpush1.bf16.msra.mxu1 %v3898_v40  ;;  %v3280_v40 = vld [vmem:[%s5949_s5 + $0x20] sm:$0xff] }
 0x152   :  { %3900 = vmatprep.subr.bf16.mxu1 %v4351_v48 }
 0x155   :  { %3902 = vmatpush1.bf16.msra.mxu1 %v3901_v43  ;;  %v1318_v43 = vld [vmem:[%s5950_s6 + $0x38] sm:$0xff] }
 0x156   :  { %3903 = vmatprep.subr.bf16.mxu1 %v4351_v48  ;;  %v3937_v44 = vpack.c.bf16 %v1318_v43, %v1316_v42 }
 0x159   :  { %3905 = vmatpush1.bf16.msra.mxu1 %v3904_v46  ;;  %v1317_v46 = vld [vmem:[%s5950_s6 + $0x30] sm:$0xff] }
 0x15a   :  { %3906 = vmatprep.subr.bf16.mxu1 %v4351_v48  ;;  %v3939_v49 = vpack.c.bf16 %v1317_v46, %v1315_v45  ;;  %v3287_v45 = vld [vmem:[%s5950_s6 + $0xf0] sm:$0xff]  ;;  %v3289_v46 = vld [vmem:[%s5950_s6 + $0x100] sm:$0xff] }
 0x15d   :  { %3908 = vmatpush1.bf16.msra.mxu1 %v3907_v52  ;;  %v1322_v52 = vld [vmem:[%s5950_s6 + $0x58] sm:$0xff] }
 0x15e   :  { %3909 = vmatprep.subr.bf16.mxu1 %v4351_v48  ;;  %v3941_v53 = vpack.c.bf16 %v1322_v52, %v1320_v50  ;;  %v3294_v50 = vld [vmem:[%s5950_s6 + $0x128] sm:$0xff] }
 0x161   :  { %3911 = vmatpush1.bf16.msra.mxu1 %v3910_v55  ;;  %v1321_v55 = vld [vmem:[%s5950_s6 + $0x50] sm:$0xff] }
 0x162   :  { %3912 = vmatprep.subr.bf16.mxu1 %v4351_v48  ;;  %v3943_v56 = vpack.c.bf16 %v1321_v55, %v1319_v54  ;;  %v1919_v54 = vld [vmem:[%s5952_s8] sm:$0xff]  ;;  %v1920_v55 = vld [vmem:[%s5952_s8 + $0x8] sm:$0xff] }
 0x165   :  { %3914 = vmatpush1.bf16.msra.mxu1 %v3913_v58  ;;  %v1326_v58 = vld [vmem:[%s5950_s6 + $0x78] sm:$0xff] }
 0x168   :  { %1063 = vmatmul.mubr.f32.vlgmr.msra.gmra.mrb[24].mxu1 %v4856_v38  ;;  %v1312_v38 = vld [vmem:[%s5950_s6 + $0x8] sm:$0xff] }
 0x169   :  { %3271 = vmatprep.mubr.msk.f32.mxu1 %vm854_vm4, %v4871_v51  ;;  %v1311_v51 = vld [vmem:[%s5950_s6] sm:$0xff] }
 0x16c   :  { %1068 = vmatmul.mubr.f32.gmra.mrb[26].mxu1 %v4868_v47  ;;  %v1314_v47 = vld [vmem:[%s5950_s6 + $0x18] sm:$0xff] }
 0x16d   :  { %3272 = vmatprep.mubr.msk.f32.mxu1 %vm854_vm4, %v4885_v59  ;;  %v1313_v59 = vld [vmem:[%s5950_s6 + $0x10] sm:$0xff] }
 0x16e   :  { %v3935_v60 = vpack.c.bf16 %v1313_v59, %v1311_v51  ;;  %v1325_v51 = vld [vmem:[%s5950_s6 + $0x70] sm:$0xff]  ;;  %v1328_v59 = vld [vmem:[%s5950_s6 + $0x88] sm:$0xff] }
 0x170   :  { %1073 = vmatmul.mubr.f32.gmra.mrb[28].mxu1 %v4882_v57  ;;  %v3933_v57 = vpack.c.bf16 %v1314_v47, %v1312_v38  ;;  %v3945_v38 = vpack.c.bf16 %v1326_v58, %v1324_v5  ;;  %v1323_v47 = vld [vmem:[%s5950_s6 + $0x60] sm:$0xff]  ;;  %v3963_v5 = vpack.c.bf16 %v3289_v46, %v3287_v45  ;;  %v4074_v58 = vpack.c.bf16 %v1920_v55, %v1919_v54  ;;  %v3311_v46 = vld [vmem:[%s5950_s6 + $0x1b0] sm:$0xff]  ;;  %v3316_v55 = vld [vmem:[%s5950_s6 + $0x1d8] sm:$0xff] }
 0x171   :  { %3273 = vmatprep.mubr.msk.f32.mxu1 %vm854_vm4, %v4899_v4 }
 0x172   :  { %3934 = vmatprep.subr.bf16.mxu1 %v3933_v57  ;;  %v3947_v57 = vpack.c.bf16 %v1325_v51, %v1323_v47  ;;  %v3291_v51 = vld [vmem:[%s5950_s6 + $0x110] sm:$0xff] }
 0x173   :  { %3936 = vmatpush1.bf16.msra.mxu1 %v3935_v60  ;;  %v1330_v60 = vld [vmem:[%s5950_s6 + $0x98] sm:$0xff] }
 0x174   :  { %1078 = vmatmul.mubr.f32.gmra.mrb[30].mxu1 %v4896_v1  ;;  %3938 = vmatprep.subr.bf16.mxu1 %v3937_v44 }
 0x175   :  { %3274 = vmatprep.mubr.msk.f32.mxu1 %vm854_vm4, %v4914_v15 }
 0x177   :  { %3940 = vmatpush1.bf16.msra.mxu1 %v3939_v49  ;;  %v3292_v49 = vld [vmem:[%s5950_s6 + $0x118] sm:$0xff] }
 0x178   :  { %1083 = vmatmul.mubr.f32.gmra.mrb[32].mxu1 %v4910_v12  ;;  %3942 = vmatprep.subr.bf16.mxu1 %v3941_v53  ;;  %v3965_v47 = vpack.c.bf16 %v3294_v50, %v3292_v49  ;;  %v3313_v49 = vld [vmem:[%s5950_s6 + $0x1c0] sm:$0xff] }
 0x179   :  { %3275 = vmatprep.mubr.msk.f32.mxu1 %vm854_vm4, %v4252_v23  ;;  %v3987_v54 = vpack.c.bf16 %v3313_v49, %v3311_v46  ;;  %v3351_v46 = vld [vmem:[%s5950_s6 + $0x2d0] sm:$0xff]  ;;  %v3353_v49 = vld [vmem:[%s5950_s6 + $0x2e0] sm:$0xff] }
 0x17b   :  { %3944 = vmatpush1.bf16.msra.mxu1 %v3943_v56  ;;  %v1921_v56 = vld [vmem:[%s5952_s8 + $0x10] sm:$0xff] }
 0x17c   :  { %1088 = vmatmul.mubr.f32.gmra.mrb[34].mxu1 %v4926_v21  ;;  %3946 = vmatprep.subr.bf16.mxu1 %v3945_v38  ;;  %v1922_v38 = vld [vmem:[%s5952_s8 + $0x18] sm:$0xff] }
 0x17d   :  { %1411 = vmatprep.mubr.f32.mxu1 %v4350_v7 }
 0x17f   :  { %3948 = vmatpush1.bf16.msra.mxu1 %v3947_v57  ;;  %v3293_v57 = vld [vmem:[%s5950_s6 + $0x120] sm:$0xff] }
 0x1ff   :  { %v939_v61 = vpop.f32.mrb[12].mxu1 }
 0x200   :  { %v941_v62 = vpop.f32.mrb[13].mxu1 }
 0x201   :  { %v1327_v62 = vld [vmem:[%s5950_s6 + $0x80] sm:$0xff] }
 0x203   :  { %v944_v63 = vpop.f32.mrb[14].mxu1 }
 0x204   :  { %v946_v0 = vpop.f32.mrb[15].mxu1 }
 0x207   :  { %v949_v1 = vpop.f32.mrb[16].mxu1 }
 0x208   :  { %v951_v2 = vpop.f32.mrb[17].mxu1 }
 0x209   :  { %v1334_v2 = vld [vmem:[%s5950_s6 + $0xb8] sm:$0xff] }
 0x20b   :  { %v954_v3 = vpop.f32.mrb[18].mxu1 }
 0x20c   :  { %v956_v4 = vpop.f32.mrb[19].mxu1 }
 0x20d   :  { %v1331_v4 = vld [vmem:[%s5950_s6 + $0xa0] sm:$0xff] }
 0x20f   :  { %v959_v6 = vpop.f32.mrb[20].mxu1 }
 0x210   :  { %v961_v8 = vpop.f32.mrb[21].mxu1 }
 0x213   :  { %v964_v9 = vpop.f32.mrb[22].mxu1 }
 0x214   :  { %v966_v10 = vpop.f32.mrb[23].mxu1 }
 0x215   :  { %v1338_v10 = vld [vmem:[%s5950_s6 + $0xd8] sm:$0xff] }
 0x23b   :  { %v1064_v11 = vpop.f32.mrb[24].mxu1 }
 0x23c   :  { %v1093_v12 = vmax.f32 %v939_v61, %v1064_v11  ;;  %v1066_v13 = vpop.f32.mrb[25].mxu1  ;;  %v3949_v61 = vpack.c.bf16 %v1330_v60, %v1328_v59  ;;  %v3296_v60 = vld [vmem:[%s5950_s6 + $0x138] sm:$0xff] }
 0x23d   :  { %v1337_v13 = vld [vmem:[%s5950_s6 + $0xd0] sm:$0xff] }
 0x23e   :  { %3950 = vmatprep.subr.bf16.mxu1 %v3949_v61  ;;  %v3298_v61 = vld [vmem:[%s5950_s6 + $0x148] sm:$0xff] }
 0x23f   :  { %v1069_v14 = vpop.f32.mrb[26].mxu1 }
 0x240   :  { %v1094_v15 = vmax.f32 %v944_v63, %v1069_v14  ;;  %v1071_v16 = vpop.f32.mrb[27].mxu1  ;;  %v1329_v63 = vld [vmem:[%s5950_s6 + $0x90] sm:$0xff] }
 0x241   :  { %v3951_v0 = vpack.c.bf16 %v1329_v63, %v1327_v62  ;;  %v3288_v16 = vld [vmem:[%s5950_s6 + $0xf8] sm:$0xff]  ;;  %v4077_v62 = vpack.c.bf16 %v1922_v38, %v1921_v56  ;;  %v1923_v63 = vld [vmem:[%s5952_s8 + $0x20] sm:$0xff]  ;;  %v3320_v56 = vld [vmem:[%s5950_s6 + $0x1e8] sm:$0xff] }
 0x242   :  { %v3916_v17 = vpack.c.bf16 %v1094_v15, %v1093_v12  ;;  %v1335_v12 = vld [vmem:[%s5950_s6 + $0xc0] sm:$0xff]  ;;  %v1340_v15 = vld [vmem:[%s5950_s6 + $0xe8] sm:$0xff] }
 0x243   :  { %v1074_v18 = vpop.f32.mrb[28].mxu1  ;;  %3952 = vmatpush1.bf16.msra.mxu1 %v3951_v0  ;;  %v3959_v14 = vpack.c.bf16 %v1337_v13, %v1335_v12  ;;  %v1924_v0 = vld [vmem:[%s5952_s8 + $0x28] sm:$0xff]  ;;  %v3319_v38 = vld [vmem:[%s5950_s6 + $0x1e0] sm:$0xff] }
 0x244   :  { %v1095_v19 = vmax.f32 %v949_v1, %v1074_v18  ;;  %v1076_v20 = vpop.f32.mrb[29].mxu1  ;;  %3917 = vmatpush3.bf16.msra.mxu0 %v3916_v17  ;;  %v1332_v1 = vld [vmem:[%s5950_s6 + $0xa8] sm:$0xff]  ;;  %v1339_v18 = vld [vmem:[%s5950_s6 + $0xe0] sm:$0xff] }
 0x245   :  { %3918 = vmatprep.subr.bf16.mxu0 %v4351_v48 }
 0x247   :  { %v1079_v21 = vpop.f32.mrb[30].mxu1 }
 0x248   :  { %v1096_v22 = vmax.f32 %v954_v3, %v1079_v21  ;;  %v1081_v23 = vpop.f32.mrb[31].mxu1  ;;  %v3953_v3 = vpack.c.bf16 %v1334_v2, %v1332_v1  ;;  %v3967_v1 = vpack.c.bf16 %v3293_v57, %v3291_v51  ;;  %v3969_v2 = vpack.c.bf16 %v3298_v61, %v3296_v60  ;;  %v3324_v51 = vld [vmem:[%s5950_s6 + $0x208] sm:$0xff]  ;;  %v3326_v57 = vld [vmem:[%s5950_s6 + $0x218] sm:$0xff]  ;;  %v3315_v61 = vld [vmem:[%s5950_s6 + $0x1d0] sm:$0xff] }
 0x249   :  { %v1936_v60 = vld [vmem:[%s5952_s8 + $0x88] sm:$0xff] }
 0x24a   :  { %v3919_v24 = vpack.c.bf16 %v1096_v22, %v1095_v19  ;;  %3954 = vmatprep.subr.bf16.mxu1 %v3953_v3  ;;  %v3295_v3 = vld [vmem:[%s5950_s6 + $0x130] sm:$0xff] }
 0x24b   :  { %v1084_v25 = vpop.f32.mrb[32].mxu1 }
 0x24c   :  { %v1097_v26 = vmax.f32 %v959_v6, %v1084_v25  ;;  %v1086_v29 = vpop.f32.mrb[33].mxu1  ;;  %3920 = vmatpush3.bf16.msra.mxu0 %v3919_v24  ;;  %v1333_v6 = vld [vmem:[%s5950_s6 + $0xb0] sm:$0xff] }
 0x24d   :  { %3921 = vmatprep.subr.bf16.mxu0 %v4351_v48  ;;  %v3955_v8 = vpack.c.bf16 %v1333_v6, %v1331_v4  ;;  %v3297_v4 = vld [vmem:[%s5950_s6 + $0x140] sm:$0xff]  ;;  %v3300_v6 = vld [vmem:[%s5950_s6 + $0x158] sm:$0xff] }
 0x24e   :  { %v3971_v13 = vpack.c.bf16 %v3297_v4, %v3295_v3 }
 0x24f   :  { %v1089_v31 = vpop.f32.mrb[34].mxu1  ;;  %3956 = vmatpush1.bf16.msra.mxu1 %v3955_v8  ;;  %v3302_v8 = vld [vmem:[%s5950_s6 + $0x168] sm:$0xff] }
 0x250   :  { %v1098_v32 = vmax.f32 %v964_v9, %v1089_v31  ;;  %v1091_v33 = vpop.f32.mrb[35].mxu1  ;;  %v1336_v9 = vld [vmem:[%s5950_s6 + $0xc8] sm:$0xff] }
 0x251   :  { %v3957_v11 = vpack.c.bf16 %v1338_v10, %v1336_v9  ;;  %v4080_v9 = vpack.c.bf16 %v1924_v0, %v1923_v63  ;;  %v1925_v10 = vld [vmem:[%s5952_s8 + $0x30] sm:$0xff]  ;;  %v3993_v0 = vpack.c.bf16 %v3326_v57, %v3324_v51  ;;  %v3362_v51 = vld [vmem:[%s5950_s6 + $0x328] sm:$0xff] }
 0x252   :  { %v3922_v34 = vpack.c.bf16 %v1098_v32, %v1097_v26 }
 0x253   :  { %3958 = vmatprep.subr.bf16.mxu1 %v3957_v11  ;;  %v1926_v11 = vld [vmem:[%s5952_s8 + $0x38] sm:$0xff] }
 0x254   :  { %3923 = vmatpush3.bf16.msra.mxu0 %v3922_v34  ;;  %3960 = vmatpush1.bf16.msra.mxu1 %v3959_v14  ;;  %v3973_v14 = vpack.c.bf16 %v3302_v8, %v3300_v6  ;;  %v3328_v6 = vld [vmem:[%s5950_s6 + $0x228] sm:$0xff]  ;;  %v3330_v8 = vld [vmem:[%s5950_s6 + $0x238] sm:$0xff] }
 0x255   :  { %3924 = vmatprep.subr.bf16.mxu0 %v4351_v48  ;;  %1375 = vmatprep.subr.mxu1 %v1340_v15  ;;  %v3299_v15 = vld [vmem:[%s5950_s6 + $0x150] sm:$0xff] }
 0x257   :  { %3579 = vmatmul.mubr.msk.f32.vlgmr.msra.gmra.mrb[12].mxu0 %vm1102_vm6, %v1099_v35 }
 0x258   :  { %3926 = vmatpush3.bf16.msra.mxu0 %v3916_v17  ;;  %3581 = vmatprep.mubr.msk.f32.mxu0 %vm4352_vm5, %v4350_v7  ;;  %v3290_v17 = vld [vmem:[%s5950_s6 + $0x108] sm:$0xff] }
 0x259   :  { %3927 = vmatprep.subr.bf16.mxu0 %v4351_v48  ;;  %v3961_v19 = vpack.c.bf16 %v3290_v17, %v3288_v16  ;;  %1376 = vmatpush1.msra.mxu1 %v1339_v18  ;;  %v3301_v16 = vld [vmem:[%s5950_s6 + $0x160] sm:$0xff]  ;;  %v3304_v17 = vld [vmem:[%s5950_s6 + $0x178] sm:$0xff]  ;;  %v3306_v18 = vld [vmem:[%s5950_s6 + $0x188] sm:$0xff] }
 0x25b   :  { %3582 = vmatmul.mubr.msk.f32.gmra.mrb[14].mxu0 %vm1102_vm6, %v1100_v36  ;;  %3962 = vmatprep.subr.bf16.mxu1 %v3961_v19  ;;  %v4083_v19 = vpack.c.bf16 %v1926_v11, %v1925_v10  ;;  %v3997_v10 = vpack.c.bf16 %v3330_v8, %v3328_v6  ;;  %v3327_v11 = vld [vmem:[%s5950_s6 + $0x220] sm:$0xff]  ;;  %v3368_v6 = vld [vmem:[%s5950_s6 + $0x358] sm:$0xff]  ;;  %v3370_v8 = vld [vmem:[%s5950_s6 + $0x368] sm:$0xff] }
 0x25c   :  { %3929 = vmatpush3.bf16.msra.mxu0 %v3919_v24  ;;  %3584 = vmatprep.mubr.msk.f32.mxu0 %vm4352_vm5, %v4350_v7 }
 0x25d   :  { %3930 = vmatprep.subr.bf16.mxu0 %v4351_v48 }
 0x25f   :  { %3585 = vmatmul.mubr.msk.f32.gmra.mrb[16].mxu0 %vm1102_vm6, %v1101_v37 }
 0x260   :  { %3932 = vmatpush3.bf16.msra.mxu0 %v3922_v34  ;;  %3599 = vmatprep.mubr.msk.f32.mxu0 %vm4352_vm5, %v4350_v7 }
 0x261   :  { %4073 = vmatprep.subr.bf16.mxu0 %v4351_v48 }
 0x263   :  { %3600 = vmatmul.mubr.msk.f32.vlgmr.msra.gmra.mrb[18].mxu0 %vm1102_vm6, %v3279_v39 }
 0x264   :  { %3602 = vmatprep.mubr.msk.f32.mxu0 %vm4352_vm5, %v4350_v7  ;;  %4075 = vmatpush1.bf16.msra.mxu0 %v4074_v58 }
 0x265   :  { %4076 = vmatprep.subr.bf16.mxu0 %v4351_v48 }
 0x267   :  { %3603 = vmatmul.mubr.msk.f32.gmra.mrb[20].mxu0 %vm1102_vm6, %v3280_v40 }
 0x268   :  { %3605 = vmatprep.mubr.msk.f32.mxu0 %vm4352_vm5, %v4350_v7  ;;  %4078 = vmatpush1.bf16.msra.mxu0 %v4077_v62 }
 0x269   :  { %4079 = vmatprep.subr.bf16.mxu0 %v4351_v48 }
 0x26b   :  { %3606 = vmatmul.mubr.msk.f32.gmra.mrb[22].mxu0 %vm1102_vm6, %v3281_v41 }
 0x26c   :  { %4081 = vmatpush1.bf16.msra.mxu0 %v4080_v9 }
 0x26d   :  { %4082 = vmatprep.subr.bf16.mxu0 %v4351_v48 }
 0x270   :  { %4084 = vmatpush1.bf16.msra.mxu0 %v4083_v19  ;;  %v3333_v19 = vld [vmem:[%s5950_s6 + $0x250] sm:$0xff] }
 0x271   :  { %4085 = vmatprep.subr.bf16.mxu0 %v4351_v48 }
 0x32a   :  { %v1178_v20 = vpop.f32.mrb[12].mxu0 }
 0x32b   :  { %v3580_v21 = vpop.f32.mrb[13].mxu0 }
 0x32c   :  { %v1928_v21 = vld [vmem:[%s5952_s8 + $0x48] sm:$0xff] }
 0x32e   :  { %v1183_v22 = vpop.f32.mrb[14].mxu0 }
 0x32f   :  { %v3583_v23 = vpop.f32.mrb[15].mxu0 }
 0x330   :  { %v3977_v23 = vpack.c.bf16 %v3306_v18, %v3304_v17  ;;  %v3331_v18 = vld [vmem:[%s5950_s6 + $0x240] sm:$0xff] }
 0x332   :  { %v1188_v24 = vpop.f32.mrb[16].mxu0 }
 0x333   :  { %v3586_v25 = vpop.f32.mrb[17].mxu0 }
 0x334   :  { %v3305_v25 = vld [vmem:[%s5950_s6 + $0x180] sm:$0xff] }
 0x336   :  { %v1271_v26 = vpop.f32.mrb[18].mxu0 }
 0x337   :  { %v1285_v29 = vmax.f32 %v1178_v20, %v1271_v26  ;;  %v3601_v31 = vpop.f32.mrb[19].mxu0  ;;  %v1927_v20 = vld [vmem:[%s5952_s8 + $0x40] sm:$0xff]  ;;  %v3308_v26 = vld [vmem:[%s5950_s6 + $0x198] sm:$0xff] }
 0x338   :  { %v4086_v31 = vpack.c.bf16 %v1928_v21, %v1927_v20  ;;  %v3336_v20 = vld [vmem:[%s5950_s6 + $0x268] sm:$0xff]  ;;  %v3338_v21 = vld [vmem:[%s5950_s6 + $0x278] sm:$0xff] }
 0x339   :  { %v1288_v32 = vmax.f32 %v1285_v29, 0.0  ;;  %v3310_v29 = vld [vmem:[%s5950_s6 + $0x1a8] sm:$0xff] }
 0x33a   :  { %v1276_v33 = vpop.f32.mrb[20].mxu0  ;;  %4087 = vmatpush1.bf16.msra.mxu0 %v4086_v31 }
 0x33b   :  { %v1294_v34 = vcombine.high %v1288_v32, %v1288_v32  ;;  %v1286_v35 = vmax.f32 %v1183_v22, %v1276_v33  ;;  %v3604_v36 = vpop.f32.mrb[21].mxu0  ;;  %v3975_v22 = vpack.c.bf16 %v3301_v16, %v3299_v15  ;;  %v1930_v33 = vld [vmem:[%s5952_s8 + $0x58] sm:$0xff]  ;;  %4088 = vmatprep.subr.bf16.mxu0 %v4351_v48 }
 0x33c   :  { %v3307_v36 = vld [vmem:[%s5950_s6 + $0x190] sm:$0xff]  ;;  %v3334_v15 = vld [vmem:[%s5950_s6 + $0x258] sm:$0xff] }
 0x33d   :  { %v1298_v37 = vcombine.low %v1288_v32, %v1294_v34  ;;  %v1289_v39 = vmax.f32 %v1286_v35, 0.0  ;;  %v1929_v32 = vld [vmem:[%s5952_s8 + $0x50] sm:$0xff]  ;;  %v3981_v35 = vpack.c.bf16 %v3310_v29, %v3308_v26  ;;  %v3340_v26 = vld [vmem:[%s5950_s6 + $0x288] sm:$0xff]  ;;  %v3342_v29 = vld [vmem:[%s5950_s6 + $0x298] sm:$0xff] }
 0x33e   :  { %v1281_v40 = vpop.f32.mrb[22].mxu0 }
 0x33f   :  { %1303 = vst.msk [vmem:[#allocation2] sm:$0xff] %vm1302_vm7, %v1298_v37  ;;  %v1287_v41 = vmax.f32 %v1188_v24, %v1281_v40  ;;  %v3607_v42 = vpop.f32.mrb[23].mxu0  ;;  %v1295_v43 = vcombine.high %v1289_v39, %v1289_v39  ;;  %v3303_v24 = vld [vmem:[%s5950_s6 + $0x170] sm:$0xff]  ;;  %v3309_v37 = vld [vmem:[%s5950_s6 + $0x1a0] sm:$0xff]  ;;  %v3314_v40 = vld [vmem:[%s5950_s6 + $0x1c8] sm:$0xff] }
 0x340   :  { %1305 = vst.msk [vmem:[#allocation2 + $0x8] sm:$0xf] %vm1304_vm8, %v1289_v39  ;;  %v3979_v34 = vpack.c.bf16 %v3305_v25, %v3303_v24  ;;  %v3312_v39 = vld [vmem:[%s5950_s6 + $0x1b8] sm:$0xff]  ;;  %v1931_v42 = vld [vmem:[%s5952_s8 + $0x60] sm:$0xff]  ;;  %v3337_v25 = vld [vmem:[%s5950_s6 + $0x270] sm:$0xff] }
 0x341   :  { %v1290_v44 = vmax.f32 %v1287_v41, 0.0  ;;  %v4089_v41 = vpack.c.bf16 %v1930_v33, %v1929_v32  ;;  %v3985_v45 = vpack.c.bf16 %v3314_v40, %v3312_v39  ;;  %v3335_v24 = vld [vmem:[%s5950_s6 + $0x260] sm:$0xff]  ;;  %v4009_v32 = vpack.c.bf16 %v3342_v29, %v3340_v26  ;;  %v3380_v26 = vld [vmem:[%s5950_s6 + $0x3b8] sm:$0xff]  ;;  %v3384_v29 = vld [vmem:[%s5950_s6 + $0x3c8] sm:$0xff] }
 0x342   :  { %v4007_v31 = vpack.c.bf16 %v3337_v25, %v3335_v24  ;;  %v3339_v33 = vld [vmem:[%s5950_s6 + $0x280] sm:$0xff] }
 0x343   :  { %v1296_v52 = vcombine.high %v1290_v44, %v1290_v44  ;;  %v1299_v53 = vcombine.low %v1295_v43, %v1290_v44  ;;  %v1932_v43 = vld [vmem:[%s5952_s8 + $0x68] sm:$0xff]  ;;  %v3983_v44 = vpack.c.bf16 %v3309_v37, %v3307_v36  ;;  %4090 = vmatpush1.bf16.msra.mxu0 %v4089_v41  ;;  %v3346_v36 = vld [vmem:[%s5950_s6 + $0x2b8] sm:$0xff]  ;;  %v3343_v40 = vld [vmem:[%s5950_s6 + $0x2a0] sm:$0xff] }
 0x344   :  { %v4092_v50 = vpack.c.bf16 %v1932_v43, %v1931_v42  ;;  %4091 = vmatprep.subr.bf16.mxu0 %v4351_v48  ;;  %v3345_v41 = vld [vmem:[%s5950_s6 + $0x2b0] sm:$0xff]  ;;  %v3348_v43 = vld [vmem:[%s5950_s6 + $0x2c8] sm:$0xff]  ;;  %v3377_v24 = vld [vmem:[%s5950_s6 + $0x3a0] sm:$0xff] }
 0x345   :  { %1306 = vst.msk [vmem:[#allocation2 + $0x10] sm:$0xff] %vm1302_vm7, %v1299_v53  ;;  %v1934_v53 = vld [vmem:[%s5952_s8 + $0x78] sm:$0xff]  ;;  %v4015_v42 = vpack.c.bf16 %v3345_v41, %v3343_v40  ;;  %v3387_v41 = vld [vmem:[%s5950_s6 + $0x3e0] sm:$0xff] }
 0x346   :  { %1307 = vst.msk [vmem:[#allocation2 + $0x18] sm:$0xf] %vm1304_vm8, %v1296_v52  ;;  %v1309_v59 = vld [vmem:[#allocation2] sm:$0xff]  ;;  %v1933_v52 = vld [vmem:[%s5952_s8 + $0x70] sm:$0xff] }
 0x347   :  { %3285 = vmatmul.mubr.msk.f32.vlgmr.msra.gmra.mrb[36].mxu1 %vm1302_vm7, %v1309_v59  ;;  %4093 = vmatpush1.bf16.msra.mxu0 %v4092_v50  ;;  %v4095_v58 = vpack.c.bf16 %v1934_v53, %v1933_v52  ;;  %v1935_v59 = vld [vmem:[%s5952_s8 + $0x80] sm:$0xff]  ;;  %v3356_v50 = vld [vmem:[%s5950_s6 + $0x2f8] sm:$0xff]  ;;  %v3358_v52 = vld [vmem:[%s5950_s6 + $0x308] sm:$0xff] }
 0x348   :  { %3964 = vmatpush1.bf16.msra.mxu1 %v3963_v5  ;;  %1417 = vmatprep.mubr.f32.mxu1 %v4350_v7  ;;  %v3322_v5 = vld [vmem:[%s5950_s6 + $0x1f8] sm:$0xff]  ;;  %v4098_v3 = vpack.c.bf16 %v1936_v60, %v1935_v59  ;;  %v1439_v4 = vld [vmem:[#allocation2 + $0x1] sm:$0xff]  ;;  %v3359_v60 = vld [vmem:[%s5950_s6 + $0x310] sm:$0xff] }
 0x349   :  { %3966 = vmatprep.subr.bf16.mxu1 %v3965_v47  ;;  %v3321_v47 = vld [vmem:[%s5950_s6 + $0x1f0] sm:$0xff]  ;;  %4094 = vmatprep.subr.bf16.mxu0 %v4351_v48  ;;  %v3989_v62 = vpack.c.bf16 %v3322_v5, %v3320_v56  ;;  %v3347_v53 = vld [vmem:[%s5950_s6 + $0x2c0] sm:$0xff]  ;;  %v4021_v56 = vpack.c.bf16 %v3358_v52, %v3356_v50 }
 0x34a   :  { %v3991_v63 = vpack.c.bf16 %v3321_v47, %v3319_v38  ;;  %v3355_v5 = vld [vmem:[%s5950_s6 + $0x2f0] sm:$0xff]  ;;  %v1559_v38 = vld [vmem:[#allocation2 + $0x2] sm:$0xff]  ;;  %v3360_v47 = vld [vmem:[%s5950_s6 + $0x318] sm:$0xff] }
 0x34b   :  { %4096 = vmatpush1.bf16.msra.mxu0 %v4095_v58  ;;  %v3357_v58 = vld [vmem:[%s5950_s6 + $0x300] sm:$0xff]  ;;  %v4025_v59 = vpack.c.bf16 %v3362_v51, %v3360_v47  ;;  %v3393_v52 = vld [vmem:[%s5950_s6 + $0x410] sm:$0xff]  ;;  %v3400_v47 = vld [vmem:[%s5950_s6 + $0x448] sm:$0xff] }
 0x34c   :  { %3968 = vmatpush1.bf16.msra.mxu1 %v3967_v1  ;;  %v1310_v12 = vld [vmem:[#allocation2 + $0x10] sm:$0xff]  ;;  %v3323_v1 = vld [vmem:[%s5950_s6 + $0x200] sm:$0xff]  ;;  %4097 = vmatprep.subr.bf16.mxu0 %v4351_v48  ;;  %v4023_v57 = vpack.c.bf16 %v3357_v58, %v3355_v5  ;;  %v3402_v51 = vld [vmem:[%s5950_s6 + $0x458] sm:$0xff] }
 0x34d   :  { %3286 = vmatmul.mubr.msk.f32.gmra.mrb[38].mxu1 %vm1302_vm7, %v1310_v12  ;;  %3970 = vmatprep.subr.bf16.mxu1 %v3969_v2  ;;  %v3325_v2 = vld [vmem:[%s5950_s6 + $0x210] sm:$0xff]  ;;  %v3391_v50 = vld [vmem:[%s5950_s6 + $0x400] sm:$0xff] }
 0x34e   :  { %1542 = vmatprep.mubr.f32.mxu1 %v4350_v7  ;;  %v3995_v9 = vpack.c.bf16 %v3325_v2, %v3323_v1  ;;  %v3329_v12 = vld [vmem:[%s5950_s6 + $0x230] sm:$0xff]  ;;  %v3395_v58 = vld [vmem:[%s5950_s6 + $0x420] sm:$0xff] }
 0x34f   :  { %4099 = vmatpush1.bf16.msra.mxu0 %v4098_v3  ;;  %v3999_v16 = vpack.c.bf16 %v3329_v12, %v3327_v11  ;;  %v3363_v3 = vld [vmem:[%s5950_s6 + $0x330] sm:$0xff]  ;;  %v3369_v12 = vld [vmem:[%s5950_s6 + $0x360] sm:$0xff] }
 0x350   :  { %3972 = vmatpush1.bf16.msra.mxu1 %v3971_v13  ;;  %v1440_v13 = vld [vmem:[#allocation2 + $0x11] sm:$0xff]  ;;  %4100 = vmatprep.subr.bf16.mxu0 %v4351_v48 }
 0x351   :  { %3974 = vmatprep.subr.bf16.mxu1 %v3973_v14  ;;  %v3332_v14 = vld [vmem:[%s5950_s6 + $0x248] sm:$0xff]  ;;  %v3367_v11 = vld [vmem:[%s5950_s6 + $0x350] sm:$0xff] }
 0x352   :  { %v4001_v17 = vpack.c.bf16 %v3334_v15, %v3332_v14  ;;  %v3374_v14 = vld [vmem:[%s5950_s6 + $0x388] sm:$0xff]  ;;  %v4035_v15 = vpack.c.bf16 %v3369_v12, %v3367_v11  ;;  %v3409_v11 = vld [vmem:[%s5950_s6 + $0x490] sm:$0xff] }
 0x354   :  { %3976 = vmatpush1.bf16.msra.mxu1 %v3975_v22  ;;  %v4003_v22 = vpack.c.bf16 %v3333_v19, %v3331_v18  ;;  %v3373_v18 = vld [vmem:[%s5950_s6 + $0x380] sm:$0xff]  ;;  %v3376_v19 = vld [vmem:[%s5950_s6 + $0x398] sm:$0xff] }
 0x355   :  { %3978 = vmatprep.subr.bf16.mxu1 %v3977_v23  ;;  %v4005_v23 = vpack.c.bf16 %v3338_v21, %v3336_v20  ;;  %v3378_v20 = vld [vmem:[%s5950_s6 + $0x3a8] sm:$0xff] }
 0x358   :  { %3980 = vmatpush1.bf16.msra.mxu1 %v3979_v34  ;;  %v3341_v34 = vld [vmem:[%s5950_s6 + $0x290] sm:$0xff] }
 0x359   :  { %3982 = vmatprep.subr.bf16.mxu1 %v3981_v35  ;;  %v3344_v35 = vld [vmem:[%s5950_s6 + $0x2a8] sm:$0xff]  ;;  %v4011_v37 = vpack.c.bf16 %v3341_v34, %v3339_v33  ;;  %v3385_v33 = vld [vmem:[%s5950_s6 + $0x3d0] sm:$0xff] }
 0x35a   :  { %v4013_v39 = vpack.c.bf16 %v3346_v36, %v3344_v35  ;;  %v3388_v34 = vld [vmem:[%s5950_s6 + $0x3e8] sm:$0xff]  ;;  %v3390_v35 = vld [vmem:[%s5950_s6 + $0x3f8] sm:$0xff]  ;;  %v3379_v36 = vld [vmem:[%s5950_s6 + $0x3b0] sm:$0xff] }
 0x35b   :  { %v4049_v40 = vpack.c.bf16 %v3390_v35, %v3388_v34 }
 0x35c   :  { %3984 = vmatpush1.bf16.msra.mxu1 %v3983_v44  ;;  %v3352_v44 = vld [vmem:[%s5950_s6 + $0x2d8] sm:$0xff] }
 0x35d   :  { %3986 = vmatprep.subr.bf16.mxu1 %v3985_v45  ;;  %v3354_v45 = vld [vmem:[%s5950_s6 + $0x2e8] sm:$0xff] }
 0x360   :  { %3988 = vmatpush1.bf16.msra.mxu1 %v3987_v54  ;;  %v4017_v54 = vpack.c.bf16 %v3354_v45, %v3352_v44  ;;  %v3392_v44 = vld [vmem:[%s5950_s6 + $0x408] sm:$0xff]  ;;  %v3394_v45 = vld [vmem:[%s5950_s6 + $0x418] sm:$0xff] }
 0x361   :  { %1506 = vmatprep.subr.mxu1 %v3316_v55  ;;  %v4019_v55 = vpack.c.bf16 %v3353_v49, %v3351_v46  ;;  %v4053_v49 = vpack.c.bf16 %v3394_v45, %v3392_v44  ;;  %v2029_v44 = vld [vmem:[%s5953_s9 + $0x40] sm:$0xff]  ;;  %v2030_v45 = vld [vmem:[%s5953_s9 + $0x48] sm:$0xff] }
 0x364   :  { %1507 = vmatpush1.msra.mxu1 %v3315_v61  ;;  %v3361_v61 = vld [vmem:[%s5950_s6 + $0x320] sm:$0xff] }
 0x365   :  { %3317 = vmatmul.mubr.msk.f32.vlgmr.msra.gmra.mrb[36].mxu1 %vm1302_vm7, %v1439_v4  ;;  %3990 = vmatprep.subr.bf16.mxu1 %v3989_v62  ;;  %v1560_v62 = vld [vmem:[#allocation2 + $0x12] sm:$0xff]  ;;  %v4027_v1 = vpack.c.bf16 %v3361_v61, %v3359_v60  ;;  %v3365_v4 = vld [vmem:[%s5950_s6 + $0x340] sm:$0xff] }
 0x366   :  { %3992 = vmatpush1.bf16.msra.mxu1 %v3991_v63  ;;  %1548 = vmatprep.mubr.f32.mxu1 %v4350_v7  ;;  %v3364_v63 = vld [vmem:[%s5950_s6 + $0x338] sm:$0xff]  ;;  %v3399_v60 = vld [vmem:[%s5950_s6 + $0x440] sm:$0xff]  ;;  %v3401_v61 = vld [vmem:[%s5950_s6 + $0x450] sm:$0xff] }
 0x367   :  { %3994 = vmatprep.subr.bf16.mxu1 %v3993_v0  ;;  %v3366_v0 = vld [vmem:[%s5950_s6 + $0x348] sm:$0xff] }
 0x368   :  { %v4029_v2 = vpack.c.bf16 %v3366_v0, %v3364_v63  ;;  %v3406_v63 = vld [vmem:[%s5950_s6 + $0x478] sm:$0xff]  ;;  %v4063_v0 = vpack.c.bf16 %v3401_v61, %v3399_v60 }
 0x369   :  { %3318 = vmatmul.mubr.msk.f32.gmra.mrb[38].mxu1 %vm1302_vm7, %v1440_v13  ;;  %v3372_v13 = vld [vmem:[%s5950_s6 + $0x378] sm:$0xff] }
 0x36a   :  { %3996 = vmatpush1.bf16.msra.mxu1 %v3995_v9  ;;  %1662 = vmatprep.mubr.f32.mxu1 %v4350_v7  ;;  %v4031_v9 = vpack.c.bf16 %v3365_v4, %v3363_v3  ;;  %v3405_v3 = vld [vmem:[%s5950_s6 + $0x470] sm:$0xff]  ;;  %v3408_v4 = vld [vmem:[%s5950_s6 + $0x488] sm:$0xff] }
 0x36b   :  { %3998 = vmatprep.subr.bf16.mxu1 %v3997_v10  ;;  %v4033_v10 = vpack.c.bf16 %v3370_v8, %v3368_v6  ;;  %v3410_v6 = vld [vmem:[%s5950_s6 + $0x498] sm:$0xff] }
 0x36e   :  { %4000 = vmatpush1.bf16.msra.mxu1 %v3999_v16  ;;  %v4037_v16 = vpack.c.bf16 %v3374_v14, %v3372_v13  ;;  %v3412_v13 = vld [vmem:[%s5950_s6 + $0x4a8] sm:$0xff]  ;;  %v3411_v14 = vld [vmem:[%s5950_s6 + $0x4a0] sm:$0xff] }
 0x36f   :  { %4002 = vmatprep.subr.bf16.mxu1 %v4001_v17  ;;  %v3371_v17 = vld [vmem:[%s5950_s6 + $0x370] sm:$0xff] }
 0x370   :  { %v4039_v21 = vpack.c.bf16 %v3373_v18, %v3371_v17  ;;  %v1937_v17 = vld [vmem:[%s5952_s8 + $0x90] sm:$0xff]  ;;  %v1938_v18 = vld [vmem:[%s5952_s8 + $0x98] sm:$0xff] }
 0x372   :  { %4004 = vmatpush1.bf16.msra.mxu1 %v4003_v22  ;;  %v4041_v22 = vpack.c.bf16 %v3378_v20, %v3376_v19  ;;  %v4101_v19 = vpack.c.bf16 %v1938_v18, %v1937_v17  ;;  %v1308_v20 = vld [vmem:[%s5951_s7] sm:$0x3]  ;;  %v2274_v17 = vld [vmem:[%s5955_s11 + $0x18] sm:$0xff] }
 0x373   :  { %4006 = vmatprep.subr.bf16.mxu1 %v4005_v23  ;;  %v3375_v23 = vld [vmem:[%s5950_s6 + $0x390] sm:$0xff] }
 0x374   :  { %v4043_v25 = vpack.c.bf16 %v3377_v24, %v3375_v23  ;;  %4102 = vmatpush1.bf16.msra.mxu0 %v4101_v19  ;;  %v2021_v23 = vld [vmem:[%s5953_s9] sm:$0xff]  ;;  %v2022_v24 = vld [vmem:[%s5953_s9 + $0x8] sm:$0xff] }
 0x375   :  { %4103 = vmatprep.subr.bf16.mxu0 %v4351_v48  ;;  %v2275_v19 = vld [vmem:[%s5955_s11 + $0x20] sm:$0xff] }
 0x376   :  { %4008 = vmatpush1.bf16.msra.mxu1 %v4007_v31  ;;  %v3386_v31 = vld [vmem:[%s5950_s6 + $0x3d8] sm:$0xff] }
 0x377   :  { %4010 = vmatprep.subr.bf16.mxu1 %v4009_v32  ;;  %v3383_v32 = vld [vmem:[%s5950_s6 + $0x3c0] sm:$0xff] }
 0x37a   :  { %4012 = vmatpush1.bf16.msra.mxu1 %v4011_v37  ;;  %v4045_v37 = vpack.c.bf16 %v3386_v31, %v3384_v29  ;;  %v4104_v31 = vpack.c.bf16 %v2022_v24, %v2021_v23  ;;  %v2278_v23 = vld [vmem:[%s5955_s11 + $0x38] sm:$0xff] }
 0x37b   :  { %4014 = vmatprep.subr.bf16.mxu1 %v4013_v39  ;;  %v4047_v39 = vpack.c.bf16 %v3385_v33, %v3383_v32 }
 0x37e   :  { %4016 = vmatpush1.bf16.msra.mxu1 %v4015_v42  ;;  %v3389_v42 = vld [vmem:[%s5950_s6 + $0x3f0] sm:$0xff] }
 0x37f   :  { %1626 = vmatprep.subr.mxu1 %v3348_v43  ;;  %v1679_v43 = vld [vmem:[#allocation2 + $0x3] sm:$0xff]  ;;  %v4051_v46 = vpack.c.bf16 %v3389_v42, %v3387_v41  ;;  %v2027_v41 = vld [vmem:[%s5953_s9 + $0x30] sm:$0xff]  ;;  %v2028_v42 = vld [vmem:[%s5953_s9 + $0x38] sm:$0xff] }
 0x382   :  { %1627 = vmatpush1.msra.mxu1 %v3347_v53  ;;  %v1680_v53 = vld [vmem:[#allocation2 + $0x13] sm:$0xff] }
 0x383   :  { %3349 = vmatmul.mubr.msk.f32.vlgmr.msra.gmra.mrb[36].mxu1 %vm1302_vm7, %v1559_v38  ;;  %4018 = vmatprep.subr.bf16.mxu1 %v4017_v54  ;;  %v3396_v54 = vld [vmem:[%s5950_s6 + $0x428] sm:$0xff]  ;;  %v3397_v38 = vld [vmem:[%s5950_s6 + $0x430] sm:$0xff] }
 0x384   :  { %4020 = vmatpush1.bf16.msra.mxu1 %v4019_v55  ;;  %1668 = vmatprep.mubr.f32.mxu1 %v4350_v7  ;;  %v3398_v55 = vld [vmem:[%s5950_s6 + $0x438] sm:$0xff] }
 0x385   :  { %4022 = vmatprep.subr.bf16.mxu1 %v4021_v56  ;;  %v4055_v56 = vpack.c.bf16 %v3393_v52, %v3391_v50  ;;  %v4057_v5 = vpack.c.bf16 %v3398_v55, %v3396_v54  ;;  %v2032_v50 = vld [vmem:[%s5953_s9 + $0x58] sm:$0xff]  ;;  %v2034_v54 = vld [vmem:[%s5953_s9 + $0x68] sm:$0xff] }
 0x387   :  { %3350 = vmatmul.mubr.msk.f32.gmra.mrb[38].mxu1 %vm1302_vm7, %v1560_v62  ;;  %v3404_v62 = vld [vmem:[%s5950_s6 + $0x468] sm:$0xff] }
 0x388   :  { %4024 = vmatpush1.bf16.msra.mxu1 %v4023_v57  ;;  %1782 = vmatprep.mubr.f32.mxu1 %v4350_v7  ;;  %v4059_v57 = vpack.c.bf16 %v3397_v38, %v3395_v58  ;;  %v2037_v38 = vld [vmem:[%s5953_s9 + $0x80] sm:$0xff] }
 0x389   :  { %4026 = vmatprep.subr.bf16.mxu1 %v4025_v59  ;;  %v4061_v59 = vpack.c.bf16 %v3402_v51, %v3400_v47  ;;  %v2038_v47 = vld [vmem:[%s5953_s9 + $0x88] sm:$0xff] }
 0x38a   :  { %v4128_v51 = vpack.c.bf16 %v2038_v47, %v2037_v38 }
 0x38c   :  { %4028 = vmatpush1.bf16.msra.mxu1 %v4027_v1  ;;  %v4065_v1 = vpack.c.bf16 %v3406_v63, %v3404_v62 }
 0x38d   :  { %4030 = vmatprep.subr.bf16.mxu1 %v4029_v2  ;;  %v3403_v2 = vld [vmem:[%s5950_s6 + $0x460] sm:$0xff] }
 0x38e   :  { %v4067_v8 = vpack.c.bf16 %v3405_v3, %v3403_v2 }
 0x390   :  { %4032 = vmatpush1.bf16.msra.mxu1 %v4031_v9  ;;  %v4069_v9 = vpack.c.bf16 %v3410_v6, %v3408_v4 }
 0x391   :  { %4034 = vmatprep.subr.bf16.mxu1 %v4033_v10  ;;  %v3407_v10 = vld [vmem:[%s5950_s6 + $0x480] sm:$0xff] }
 0x392   :  { %v4071_v12 = vpack.c.bf16 %v3409_v11, %v3407_v10  ;;  %v2119_v10 = vld [vmem:[%s5954_s10] sm:$0x3]  ;;  %v3454_v11 = vld [vmem:[%s5954_s10 + $0xc] sm:$0x3] }
 0x394   :  { %4036 = vmatpush1.bf16.msra.mxu1 %v4035_v15  ;;  %v1799_v15 = vld [vmem:[#allocation2 + $0x4] sm:$0xff] }
 0x395   :  { %4038 = vmatprep.subr.bf16.mxu1 %v4037_v16  ;;  %v1800_v16 = vld [vmem:[#allocation2 + $0x14] sm:$0xff] }
 0x398   :  { %4040 = vmatpush1.bf16.msra.mxu1 %v4039_v21  ;;  %v1432_v21 = vrot.slane %v1308_v20, %v200_v30  ;;  %v2023_v30 = vld [vmem:[%s5953_s9 + $0x10] sm:$0xff] }
 0x399   :  { %4042 = vmatprep.subr.bf16.mxu1 %v4041_v22  ;;  %v1428_v22 = vrot.slane %v1308_v20, %v196_v28  ;;  %v4107_v35 = vpack.c.bf16 %v2024_v27, %v2023_v30  ;;  %v2276_v20 = vld [vmem:[%s5955_s11 + $0x28] sm:$0xff] }
 0x39c   :  { %4044 = vmatpush1.bf16.msra.mxu1 %v4043_v25 }
 0x39d   :  { %1746 = vmatprep.subr.mxu1 %v3380_v26 }
 0x3a0   :  { %1747 = vmatpush1.msra.mxu1 %v3379_v36 }
 0x3a1   :  { %3381 = vmatmul.mubr.msk.f32.vlgmr.msra.gmra.mrb[36].mxu1 %vm1302_vm7, %v1679_v43  ;;  %4046 = vmatprep.subr.bf16.mxu1 %v4045_v37  ;;  %v2025_v37 = vld [vmem:[%s5953_s9 + $0x20] sm:$0xff]  ;;  %v4113_v43 = vpack.c.bf16 %v2028_v42, %v2027_v41  ;;  %v3431_v41 = vld [vmem:[%s5955_s11 + $0x68] sm:$0xff] }
 0x3a2   :  { %4048 = vmatpush1.bf16.msra.mxu1 %v4047_v39  ;;  %1788 = vmatprep.mubr.f32.mxu1 %v4350_v7  ;;  %v2026_v39 = vld [vmem:[%s5953_s9 + $0x28] sm:$0xff] }
 0x3a3   :  { %4050 = vmatprep.subr.bf16.mxu1 %v4049_v40  ;;  %v4110_v40 = vpack.c.bf16 %v2026_v39, %v2025_v37  ;;  %v3426_v37 = vld [vmem:[%s5954_s10 + $0x6] sm:$0x3] }
 0x3a5   :  { %3382 = vmatmul.mubr.msk.f32.gmra.mrb[38].mxu1 %vm1302_vm7, %v1680_v53  ;;  %v2033_v53 = vld [vmem:[%s5953_s9 + $0x60] sm:$0xff] }
 0x3a6   :  { %4052 = vmatpush1.bf16.msra.mxu1 %v4051_v46  ;;  %1902 = vmatprep.mubr.f32.mxu1 %v4350_v7  ;;  %v4116_v46 = vpack.c.bf16 %v2030_v45, %v2029_v44  ;;  %v4122_v55 = vpack.c.bf16 %v2034_v54, %v2033_v53  ;;  %v3433_v44 = vld [vmem:[%s5955_s11 + $0x78] sm:$0xff] }
 0x3a7   :  { %4054 = vmatprep.subr.bf16.mxu1 %v4053_v49  ;;  %v2031_v49 = vld [vmem:[%s5953_s9 + $0x50] sm:$0xff]  ;;  %v3437_v53 = vld [vmem:[%s5955_s11 + $0x98] sm:$0xff] }
 0x3a8   :  { %v4119_v52 = vpack.c.bf16 %v2032_v50, %v2031_v49  ;;  %v3435_v49 = vld [vmem:[%s5955_s11 + $0x88] sm:$0xff] }
 0x3aa   :  { %4056 = vmatpush1.bf16.msra.mxu1 %v4055_v56  ;;  %v2035_v56 = vld [vmem:[%s5953_s9 + $0x70] sm:$0xff] }
 0x3ab   :  { %4058 = vmatprep.subr.bf16.mxu1 %v4057_v5  ;;  %v2036_v5 = vld [vmem:[%s5953_s9 + $0x78] sm:$0xff] }
 0x3ac   :  { %v4125_v58 = vpack.c.bf16 %v2036_v5, %v2035_v56 }
 0x3ae   :  { %4060 = vmatpush1.bf16.msra.mxu1 %v4059_v57  ;;  %v2039_v57 = vld [vmem:[%s5953_s9 + $0x90] sm:$0xff] }
 0x3af   :  { %4062 = vmatprep.subr.bf16.mxu1 %v4061_v59  ;;  %v2040_v59 = vld [vmem:[%s5953_s9 + $0x98] sm:$0xff] }
 0x3b0   :  { %v4131_v60 = vpack.c.bf16 %v2040_v59, %v2039_v57  ;;  %v3439_v57 = vld [vmem:[%s5954_s10 + $0x8] sm:$0x3]  ;;  %v3443_v59 = vld [vmem:[%s5955_s11 + $0xa0] sm:$0xff] }
 0x3b2   :  { %4064 = vmatpush1.bf16.msra.mxu1 %v4063_v0 }
 0x3b3   :  { %4066 = vmatprep.subr.bf16.mxu1 %v4065_v1 }
 0x3b6   :  { %4068 = vmatpush1.bf16.msra.mxu1 %v4067_v8 }
 0x3b7   :  { %4070 = vmatprep.subr.bf16.mxu1 %v4069_v9 }
 0x3ba   :  { %4072 = vmatpush1.bf16.msra.mxu1 %v4071_v12  ;;  %v2271_v12 = vld [vmem:[%s5955_s11] sm:$0xff] }
 0x3bb   :  { %1866 = vmatprep.subr.mxu1 %v3412_v13  ;;  %v2272_v13 = vld [vmem:[%s5955_s11 + $0x8] sm:$0xff] }
 0x3be   :  { %1867 = vmatpush1.msra.mxu1 %v3411_v14  ;;  %v3420_v14 = vld [vmem:[%s5954_s10 + $0x2] sm:$0x3] }
 0x3bf   :  { %3413 = vmatmul.mubr.msk.f32.vlgmr.msra.gmra.mrb[36].mxu1 %vm1302_vm7, %v1799_v15  ;;  %4196 = vmatprep.subr.bf16.mxu1 %v4351_v48  ;;  %v4140_v15 = vpack.c.bf16 %v2272_v13, %v2271_v12 }
 0x3c0   :  { %1908 = vmatprep.mubr.f32.mxu1 %v4350_v7 }
 0x3c3   :  { %3414 = vmatmul.mubr.msk.f32.gmra.mrb[38].mxu1 %vm1302_vm7, %v1800_v16  ;;  %v2273_v16 = vld [vmem:[%s5955_s11 + $0x10] sm:$0xff] }
 0x3c4   :  { %3723 = vmatprep.mubr.msk.f32.mxu1 %vm4352_vm5, %v4350_v7  ;;  %v4143_v18 = vpack.c.bf16 %v2274_v17, %v2273_v16 }
 0x492   :  { %v1904_v25 = vpop.f32.mrb[36].mxu1 }
 0x493   :  { %v1906_v26 = vpop.f32.mrb[37].mxu1  ;;  %v4253_v32 = vadd.f32 %v1904_v25, %v1428_v22  ;;  %v2279_v25 = vld [vmem:[%s5955_s11 + $0x40] sm:$0xff] }
 0x494   :  { %v4254_v29 = vadd.f32 %v1906_v26, %v1432_v21  ;;  %v2280_v26 = vld [vmem:[%s5955_s11 + $0x48] sm:$0xff] }
 0x496   :  { %v1910_v28 = vpop.f32.mrb[38].mxu1  ;;  %3415 = vmatprep.mubr.msk.f32.mxu0 %vm1939_vm9, %v4254_v29 }
 0x497   :  { %v1912_v33 = vpop.f32.mrb[39].mxu1  ;;  %2011 = vmatmul.mubr.f32.vlgmr.msra.gmra.mrb[24].mxu0 %v4253_v32  ;;  %v4255_v36 = vadd.f32 %v1910_v28, %v1428_v22  ;;  %v2277_v22 = vld [vmem:[%s5955_s11 + $0x30] sm:$0xff] }
 0x498   :  { %v4256_v34 = vadd.f32 %v1912_v33, %v1432_v21  ;;  %4105 = vmatpush1.bf16.msra.mxu0 %v4104_v31  ;;  %v4146_v21 = vpack.c.bf16 %v2276_v20, %v2275_v19  ;;  %v4149_v24 = vpack.c.bf16 %v2278_v23, %v2277_v22  ;;  %v3075_v19 = vld [vmem:[%s5957_s13 + $0x8] sm:$0xff]  ;;  %v3076_v20 = vld [vmem:[%s5957_s13 + $0x10] sm:$0xff]  ;;  %v3077_v22 = vld [vmem:[%s5957_s13 + $0x18] sm:$0xff] }
 0x499   :  { %4106 = vmatprep.subr.bf16.mxu0 %v4351_v48  ;;  %v4221_v23 = vpack.c.bf16 %v3077_v22, %v3076_v20 }
 0x49a   :  { %3416 = vmatprep.mubr.msk.f32.mxu0 %vm1939_vm9, %v4256_v34 }
 0x49b   :  { %2016 = vmatmul.mubr.f32.gmra.mrb[26].mxu0 %v4255_v36 }
 0x49c   :  { %4108 = vmatpush1.bf16.msra.mxu0 %v4107_v35  ;;  %3417 = vmatprep.mubr.msk.f32.mxu0 %vm1939_vm9, %v4254_v29  ;;  %v4152_v29 = vpack.c.bf16 %v2280_v26, %v2279_v25  ;;  %v3428_v35 = vld [vmem:[%s5955_s11 + $0x50] sm:$0xff]  ;;  %v3079_v25 = vld [vmem:[%s5957_s13 + $0x28] sm:$0xff] }
 0x49d   :  { %4109 = vmatprep.subr.bf16.mxu0 %v4351_v48 }
 0x4a0   :  { %4111 = vmatpush1.bf16.msra.mxu0 %v4110_v40  ;;  %v3430_v40 = vld [vmem:[%s5955_s11 + $0x60] sm:$0xff] }
 0x4a1   :  { %4112 = vmatprep.subr.bf16.mxu0 %v4351_v48  ;;  %v4164_v42 = vpack.c.bf16 %v3431_v41, %v3430_v40  ;;  %v3462_v40 = vld [vmem:[%s5955_s11 + $0x110] sm:$0xff]  ;;  %v3463_v41 = vld [vmem:[%s5955_s11 + $0x118] sm:$0xff] }
 0x4a4   :  { %4114 = vmatpush1.bf16.msra.mxu0 %v4113_v43  ;;  %v3432_v43 = vld [vmem:[%s5955_s11 + $0x70] sm:$0xff] }
 0x4a5   :  { %4115 = vmatprep.subr.bf16.mxu0 %v4351_v48  ;;  %v4167_v45 = vpack.c.bf16 %v3433_v44, %v3432_v43  ;;  %v3464_v43 = vld [vmem:[%s5955_s11 + $0x120] sm:$0xff] }
 0x4a8   :  { %4117 = vmatpush1.bf16.msra.mxu0 %v4116_v46  ;;  %v3434_v46 = vld [vmem:[%s5955_s11 + $0x80] sm:$0xff] }
 0x4a9   :  { %4118 = vmatprep.subr.bf16.mxu0 %v4351_v48  ;;  %v4170_v50 = vpack.c.bf16 %v3435_v49, %v3434_v46  ;;  %v3467_v46 = vld [vmem:[%s5955_s11 + $0x138] sm:$0xff] }
 0x4ac   :  { %4120 = vmatpush1.bf16.msra.mxu0 %v4119_v52  ;;  %v3436_v52 = vld [vmem:[%s5955_s11 + $0x90] sm:$0xff] }
 0x4ad   :  { %4121 = vmatprep.subr.bf16.mxu0 %v4351_v48  ;;  %v4173_v54 = vpack.c.bf16 %v3437_v53, %v3436_v52  ;;  %v3080_v52 = vld [vmem:[%s5957_s13 + $0x30] sm:$0xff]  ;;  %v3081_v53 = vld [vmem:[%s5957_s13 + $0x38] sm:$0xff] }
 0x4b0   :  { %4123 = vmatpush1.bf16.msra.mxu0 %v4122_v55  ;;  %v3456_v55 = vld [vmem:[%s5954_s10 + $0xe] sm:$0x3] }
 0x4b1   :  { %4124 = vmatprep.subr.bf16.mxu0 %v4351_v48 }
 0x4b4   :  { %4126 = vmatpush1.bf16.msra.mxu0 %v4125_v58 }
 0x4b5   :  { %4127 = vmatprep.subr.bf16.mxu0 %v4351_v48 }
 0x4b8   :  { %4129 = vmatpush1.bf16.msra.mxu0 %v4128_v51 }
 0x4b9   :  { %4130 = vmatprep.subr.bf16.mxu0 %v4351_v48 }
 0x4bc   :  { %4132 = vmatpush1.bf16.msra.mxu0 %v4131_v60  ;;  %v3444_v60 = vld [vmem:[%s5955_s11 + $0xa8] sm:$0xff] }
 0x4bd   :  { %4133 = vmatprep.subr.bf16.mxu0 %v4351_v48 }
 0x4bf   :  { %2106 = vmatmul.mubr.f32.vlgmr.msra.gmra.mrb[28].mxu0 %v4253_v32 }
 0x4c0   :  { %3418 = vmatprep.mubr.msk.f32.mxu0 %vm1939_vm9, %v4256_v34  ;;  %v3424_v34 = vld [vmem:[%s5954_s10 + $0x4] sm:$0x3] }
 0x4c3   :  { %2111 = vmatmul.mubr.f32.gmra.mrb[30].mxu0 %v4255_v36  ;;  %v3429_v36 = vld [vmem:[%s5955_s11 + $0x58] sm:$0xff] }
 0x4c4   :  { %3612 = vmatprep.mubr.msk.f32.mxu0 %vm4352_vm5, %v4350_v7  ;;  %v4161_v39 = vpack.c.bf16 %v3429_v36, %v3428_v35  ;;  %v3460_v36 = vld [vmem:[%s5955_s11 + $0x100] sm:$0xff] }
 0x56a   :  { %v2012_v61 = vpop.f32.mrb[24].mxu0 }
 0x56b   :  { %v2014_v62 = vpop.f32.mrb[25].mxu0 }
 0x56c   :  { %v4182_v62 = vpack.c.bf16 %v3444_v60, %v3443_v59 }
 0x56e   :  { %v2017_v63 = vpop.f32.mrb[26].mxu0 }
 0x56f   :  { %v2019_v0 = vpop.f32.mrb[27].mxu0 }
 0x570   :  { %v3446_v0 = vld [vmem:[%s5955_s11 + $0xb8] sm:$0xff] }
 0x592   :  { %v2107_v1 = vpop.f32.mrb[28].mxu0 }
 0x593   :  { %v2116_v2 = vmax.f32 %v2012_v61, %v2107_v1  ;;  %v2109_v3 = vpop.f32.mrb[29].mxu0  ;;  %v3441_v61 = vld [vmem:[%s5954_s10 + $0xa] sm:$0x3] }
 0x594   :  { %v3448_v3 = vld [vmem:[%s5955_s11 + $0xc8] sm:$0xff] }
 0x596   :  { %v2112_v4 = vpop.f32.mrb[30].mxu0 }
 0x597   :  { %v2117_v6 = vmax.f32 %v2017_v63, %v2112_v4  ;;  %v2114_v8 = vpop.f32.mrb[31].mxu0  ;;  %v3445_v63 = vld [vmem:[%s5955_s11 + $0xb0] sm:$0xff] }
 0x598   :  { %v4185_v1 = vpack.c.bf16 %v3446_v0, %v3445_v63  ;;  %v3450_v8 = vld [vmem:[%s5955_s11 + $0xd8] sm:$0xff] }
 0x599   :  { %v5684_v9 = vpack.c.bf16 %v2117_v6, %v2116_v2  ;;  %v3447_v2 = vld [vmem:[%s5955_s11 + $0xc0] sm:$0xff]  ;;  %v3449_v6 = vld [vmem:[%s5955_s11 + $0xd0] sm:$0xff] }
 0x59a   :  { %v4188_v4 = vpack.c.bf16 %v3448_v3, %v3447_v2 }
 0x59b   :  { %4135 = vmatpush3.bf16.msra.mxu0 %v5684_v9  ;;  %4198 = vmatpush3.bf16.msra.mxu1 %v5684_v9 }
 0x59c   :  { %4136 = vmatprep.subr.bf16.mxu0 %v4351_v48  ;;  %4199 = vmatprep.subr.bf16.mxu1 %v4351_v48 }
 0x59e   :  { %3613 = vmatmul.mubr.msk.f32.vlgmr.msra.gmra.mrb[32].mxu0 %vm2120_vm10, %v2119_v10  ;;  %3724 = vmatmul.mubr.msk.f32.vlgmr.msra.gmra.mrb[40].mxu1 %vm2120_vm10, %v3454_v11  ;;  %v3451_v10 = vld [vmem:[%s5955_s11 + $0xe0] sm:$0xff]  ;;  %v3452_v11 = vld [vmem:[%s5955_s11 + $0xe8] sm:$0xff] }
 0x59f   :  { %4138 = vmatpush3.bf16.msra.mxu0 %v5684_v9  ;;  %4201 = vmatpush3.bf16.msra.mxu1 %v5684_v9  ;;  %v4194_v12 = vpack.c.bf16 %v3452_v11, %v3451_v10 }
 0x5a0   :  { %3619 = vmatprep.mubr.msk.f32.mxu0 %vm4352_vm5, %v4350_v7  ;;  %4139 = vmatprep.subr.bf16.mxu0 %v4351_v48 }
 0x5a1   :  { %3730 = vmatprep.mubr.msk.f32.mxu1 %vm4352_vm5, %v4350_v7  ;;  %4217 = vmatprep.subr.bf16.mxu1 %v4351_v48 }
 0x5a2   :  { %3620 = vmatmul.mubr.msk.f32.vlgmr.msra.gmra.mrb[34].mxu0 %vm2120_vm10, %v3420_v14  ;;  %3731 = vmatmul.mubr.msk.f32.vlgmr.msra.gmra.mrb[42].mxu1 %vm2120_vm10, %v3456_v55  ;;  %v3423_v55 = vld [vmem:[%s5956_s12] ss:$0 sm:$0xff]  ;;  %s4353_s12 = smov [#allocation3]  }
 0x5a3   :  { %4141 = vmatpush3.bf16.msra.mxu0 %v4140_v15  ;;  %3642 = vmatprep.mubr.msk.f32.mxu0 %vm4352_vm5, %v4350_v7 }
 0x5a4   :  { %4142 = vmatprep.subr.bf16.mxu0 %v4351_v48  ;;  %3772 = vmatprep.mubr.msk.f32.mxu1 %vm4352_vm5, %v4350_v7 }
 0x5a7   :  { %4144 = vmatpush3.bf16.msra.mxu0 %v4143_v18  ;;  %v3074_v18 = vld [vmem:[%s5957_s13] sm:$0xff] }
 0x5a8   :  { %4145 = vmatprep.subr.bf16.mxu0 %v4351_v48 }
 0x5ab   :  { %4147 = vmatpush3.bf16.msra.mxu0 %v4146_v21  ;;  %v4218_v21 = vpack.c.bf16 %v3075_v19, %v3074_v18 }
 0x5ac   :  { %4148 = vmatprep.subr.bf16.mxu0 %v4351_v48 }
 0x5ad   :  { %4219 = vmatpush3.bf16.msra.mxu1 %v4218_v21 }
 0x5ae   :  { %4220 = vmatprep.subr.bf16.mxu1 %v4351_v48 }
 0x5af   :  { %4150 = vmatpush3.bf16.msra.mxu0 %v4149_v24  ;;  %v3078_v24 = vld [vmem:[%s5957_s13 + $0x20] sm:$0xff]  ;;  %s3184_s13 = sshll.u32 %s4353_s12, 4  ;;  %s3185_s13 = int_to_ptr.vmem [resolvable:$true] %s3184_s13 }
 0x5b0   :  { %4151 = vmatprep.subr.bf16.mxu0 %v4351_v48  ;;  %v4224_v26 = vpack.c.bf16 %v3079_v25, %v3078_v24  ;;  %p4330_p1 = scmp.lt.s32.totalorder %s3185_s13, %s3185_s13 }
 0x5b1   :  { %4222 = vmatpush3.bf16.msra.mxu1 %v4221_v23 }
 0x5b2   :  { %4223 = vmatprep.subr.bf16.mxu1 %v4351_v48 }
 0x5b3   :  { %4153 = vmatpush3.bf16.msra.mxu0 %v4152_v29 }
 0x5b4   :  { %4154 = vmatprep.subr.bf16.mxu0 %v4351_v48 }
 0x5b5   :  { %4225 = vmatpush3.bf16.msra.mxu1 %v4224_v26 }
 0x5b6   :  { %4226 = vmatprep.subr.bf16.mxu1 %v4351_v48 }
 0x671   :  { %v2190_v31 = vpop.f32.mrb[32].mxu0  ;;  %v2907_v13 = vpop.f32.mrb[40].mxu1 }
 0x672   :  { %v3614_v32 = vpop.f32.mrb[33].mxu0  ;;  %v3725_v14 = vpop.f32.mrb[41].mxu1 }
 0x673   :  { %v3458_v32 = vld [vmem:[%s5955_s11 + $0xf0] sm:$0xff] }
 0x675   :  { %v2265_v30 = vpop.f32.mrb[34].mxu0  ;;  %v2982_v15 = vpop.f32.mrb[42].mxu1 }
 0x676   :  { %v2269_v27 = vmax.f32 %v2190_v31, %v2265_v30  ;;  %v3621_v28 = vpop.f32.mrb[35].mxu0  ;;  %v2986_v16 = vmax.f32 %v2907_v13, %v2982_v15  ;;  %v3732_v17 = vpop.f32.mrb[43].mxu1  ;;  %v3459_v30 = vld [vmem:[%s5955_s11 + $0xf8] sm:$0xff] }
 0x678   :  { %v2270_v33 = vmax.f32 %v2269_v27, 0.0 }
 0x67a   :  { %3643 = vmatmul.mubr.msk.f32.vlgmr.msra.gmra.mrb[36].mxu0 %vm2281_vm11, %v2270_v33 }
 0x67b   :  { %4156 = vmatpush3.bf16.msra.mxu0 %v5684_v9  ;;  %3649 = vmatprep.mubr.msk.f32.mxu0 %vm4352_vm5, %v4350_v7 }
 0x67c   :  { %4157 = vmatprep.subr.bf16.mxu0 %v4351_v48 }
 0x67e   :  { %3650 = vmatmul.mubr.msk.f32.vlgmr.msra.gmra.mrb[38].mxu0 %vm2120_vm10, %v3424_v34  ;;  %v4203_v34 = vpack.c.bf16 %v3459_v30, %v3458_v32 }
 0x67f   :  { %4159 = vmatpush3.bf16.msra.mxu0 %v5684_v9  ;;  %3656 = vmatprep.mubr.msk.f32.mxu0 %vm4352_vm5, %v4350_v7 }
 0x680   :  { %4160 = vmatprep.subr.bf16.mxu0 %v4351_v48 }
 0x682   :  { %3657 = vmatmul.mubr.msk.f32.vlgmr.msra.gmra.mrb[40].mxu0 %vm2120_vm10, %v3426_v37  ;;  %v3461_v37 = vld [vmem:[%s5955_s11 + $0x108] sm:$0xff] }
 0x683   :  { %4162 = vmatpush3.bf16.msra.mxu0 %v4161_v39  ;;  %3679 = vmatprep.mubr.msk.f32.mxu0 %vm4352_vm5, %v4350_v7  ;;  %v4206_v39 = vpack.c.bf16 %v3461_v37, %v3460_v36 }
 0x684   :  { %4163 = vmatprep.subr.bf16.mxu0 %v4351_v48 }
 0x687   :  { %4165 = vmatpush3.bf16.msra.mxu0 %v4164_v42  ;;  %v4209_v42 = vpack.c.bf16 %v3463_v41, %v3462_v40 }
 0x688   :  { %4166 = vmatprep.subr.bf16.mxu0 %v4351_v48 }
 0x68b   :  { %4168 = vmatpush3.bf16.msra.mxu0 %v4167_v45  ;;  %v3466_v45 = vld [vmem:[%s5955_s11 + $0x130] sm:$0xff] }
 0x68c   :  { %4169 = vmatprep.subr.bf16.mxu0 %v4351_v48  ;;  %v4215_v49 = vpack.c.bf16 %v3467_v46, %v3466_v45 }
 0x68f   :  { %4171 = vmatpush3.bf16.msra.mxu0 %v4170_v50  ;;  %v2987_v50 = vmax.f32 %v2986_v16, 0.0 }
 0x690   :  { %4172 = vmatprep.subr.bf16.mxu0 %v4351_v48 }
 0x693   :  { %4174 = vmatpush3.bf16.msra.mxu0 %v4173_v54  ;;  %v4227_v54 = vpack.c.bf16 %v3081_v53, %v3080_v52 }
 0x694   :  { %4175 = vmatprep.subr.bf16.mxu0 %v4351_v48 }
 0x695   :  { %4228 = vmatpush3.bf16.msra.mxu1 %v4227_v54 }
 0x751   :  { %v2433_v56 = vpop.f32.mrb[38].mxu0 }
 0x752   :  { %v3651_v5 = vpop.f32.mrb[39].mxu0 }
 0x755   :  { %v2508_v58 = vpop.f32.mrb[40].mxu0 }
 0x756   :  { %v2512_v38 = vmax.f32 %v2433_v56, %v2508_v58  ;;  %v3658_v47 = vpop.f32.mrb[41].mxu0 }
 0x758   :  { %v2513_v51 = vmax.f32 %v2512_v38, 0.0  ;;  %v3469_v38 = vld [vmem:[%s5958_s14] ss:$0 sm:$0xff]  ;;  %s4325_s14 = scalar_lea.vmem %s3185_s13, 32 }
 0x759   :  { %p4326_p0 = scmp.ne.s32.totalorder %s3185_s13, %s4325_s14  ;;  %p4331_p2 = scmp.lt.s32.totalorder %s4325_s14, %s4325_s14 }
 0x75a   :  { %3680 = vmatmul.mubr.msk.f32.vlgmr.msra.gmra.mrb[36].mxu0 %vm2281_vm11, %v2513_v51 }
 0x75b   :  { %4177 = vmatpush3.bf16.msra.mxu0 %v5684_v9  ;;  %3686 = vmatprep.mubr.msk.f32.mxu0 %vm4352_vm5, %v4350_v7  ;;  %p4332_p3 = por %p4331_p2, %p4330_p1 }
 0x75c   :  { %4178 = vmatprep.subr.bf16.mxu0 %v4351_v48 }
 0x75d   :  { %p4333_p4 = pnand %p4332_p3, %p4326_p0 }
 0x75e   :  { %3687 = vmatmul.mubr.msk.f32.vlgmr.msra.gmra.mrb[42].mxu0 %vm2120_vm10, %v3439_v57 }
 0x75f   :  { %4180 = vmatpush3.bf16.msra.mxu0 %v5684_v9  ;;  %3693 = vmatprep.mubr.msk.f32.mxu0 %vm4352_vm5, %v4350_v7  ;;  %v4191_v9 = vpack.c.bf16 %v3450_v8, %v3449_v6 }
 0x760   :  { %4181 = vmatprep.subr.bf16.mxu0 %v4351_v48 }
 0x762   :  { %3694 = vmatmul.mubr.msk.f32.vlgmr.msra.gmra.mrb[44].mxu0 %vm2120_vm10, %v3441_v61 }
 0x763   :  { %4183 = vmatpush3.bf16.msra.mxu0 %v4182_v62  ;;  %3716 = vmatprep.mubr.msk.f32.mxu0 %vm4352_vm5, %v4350_v7 }
 0x764   :  { %4184 = vmatprep.subr.bf16.mxu0 %v4351_v48 }
 0x767   :  { %4186 = vmatpush3.bf16.msra.mxu0 %v4185_v1 }
 0x768   :  { %4187 = vmatprep.subr.bf16.mxu0 %v4351_v48 }
 0x76b   :  { %4189 = vmatpush3.bf16.msra.mxu0 %v4188_v4 }
 0x76c   :  { %4190 = vmatprep.subr.bf16.mxu0 %v4351_v48 }
 0x76f   :  { %4192 = vmatpush3.bf16.msra.mxu0 %v4191_v9 }
 0x770   :  { %4193 = vmatprep.subr.bf16.mxu0 %v4351_v48 }
 0x773   :  { %4195 = vmatpush3.bf16.msra.mxu0 %v4194_v12 }
 0x774   :  { %4202 = vmatprep.subr.bf16.mxu0 %v4351_v48 }
 0x831   :  { %v2670_v29 = vpop.f32.mrb[42].mxu0 }
 0x832   :  { %v3688_v31 = vpop.f32.mrb[43].mxu0 }
 0x835   :  { %v2745_v27 = vpop.f32.mrb[44].mxu0 }
 0x836   :  { %v2749_v28 = vmax.f32 %v2670_v29, %v2745_v27  ;;  %v3695_v33 = vpop.f32.mrb[45].mxu0 }
 0x838   :  { %v2750_v35 = vmax.f32 %v2749_v28, 0.0 }
 0x83a   :  { %3717 = vmatmul.mubr.msk.f32.vlgmr.msra.gmra.mrb[36].mxu0 %vm2281_vm11, %v2750_v35 }
 0x83b   :  { %4204 = vmatpush3.bf16.msra.mxu0 %v4203_v34  ;;  %3753 = vmatprep.mubr.msk.f32.mxu0 %vm4352_vm5, %v4350_v7  ;;  %v3465_v7 = vld [vmem:[%s5955_s11 + $0x128] sm:$0xff] }
 0x83c   :  { %4205 = vmatprep.subr.bf16.mxu0 %v4351_v48  ;;  %v4212_v44 = vpack.c.bf16 %v3465_v7, %v3464_v43 }
 0x83f   :  { %4207 = vmatpush3.bf16.msra.mxu0 %v4206_v39 }
 0x840   :  { %4208 = vmatprep.subr.bf16.mxu0 %v4351_v48 }
 0x843   :  { %4210 = vmatpush3.bf16.msra.mxu0 %v4209_v42 }
 0x844   :  { %4211 = vmatprep.subr.bf16.mxu0 %v4351_v48 }
 0x847   :  { %4213 = vmatpush3.bf16.msra.mxu0 %v4212_v44 }
 0x848   :  { %4214 = vmatprep.subr.bf16.mxu0 %v4351_v48 }
 0x84b   :  { %4216 = vmatpush3.bf16.msra.mxu0 %v4215_v49 }
 0x84e   :  { %3754 = vmatmul.mubr.msk.f32.vlgmr.msra.gmra.mrb[36].mxu0 %vm2281_vm11, %v2987_v50 }
 0x921   :  { %v3068_v56 = vpop.f32.mrb[36].mxu0 }
 0x922   :  { %v4257_v48 = vadd.f32 %v3423_v55, %v3068_v56  ;;  %v3755_v5 = vpop.f32.mrb[37].mxu0 }
 0x924   :  { %v3073_v58 = vmax.f32 %v4257_v48, 0.0 }
 0x926   :  { %3773 = vmatmul.mubr.msk.f32.vlgmr.msra.gmra.mrb[44].mxu1 %vm3089_vm12, %v3073_v58 }
 0x9f9   :  { %v3159_v47 = vpop.f32.mrb[44].mxu1 }
 0x9fa   :  { %v3160_v51 = vadd.f32 %v3469_v38, %v3159_v47  ;;  %v3774_v57 = vpop.f32.mrb[45].mxu1 }
 0x9fc   :  { %v3164_v59 = vsel %vm3163_vm13, %v3160_v51, -inf }
 0x9fd   :  { %3165 = vmax.xlane.f32.xlu0 %v3164_v59 }
 0xa8a   :  { %v3166_v60 = vpop.xlane.xlu0 %3165 }
 0xa8b   :  { %v3167_v61 = vsub.f32 %v3160_v51, %v3166_v60 }
 0xa8d   :  { %v3168_v62 = vmul.f32 1.442695, %v3167_v61 }
 0xa8f   :  { %4321 = vpow2.f32 %v3168_v62 }
 0xa99   :  { %v4322_v63 = vpop.eup %4321 }
 0xa9a   :  { %v3170_v0 = vsel %vm3163_vm13, %v4322_v63, 0.0 }
 0xa9b   :  { %3171 = vadd.xlane.f32.xlu0 %v3170_v0 }
 0xb28   :  { %v3172_v1 = vpop.xlane.xlu0 %3171 }
 0xb29   :  { %4323 = vlog2.f32 %v3172_v1 }
 0xb33   :  { %v4324_v2 = vpop.eup %4323 }
 0xb34   :  { %v3174_v3 = vmul.f32 0.6931472, %v4324_v2 }
 0xb36   :  { %v3175_v4 = vsub.f32 %v3167_v61, %v3174_v3 }
 0xb38   :  { %3177 = vst.msk [vmem:[#allocation3] sm:$0x3] %vm3176_vm14, %v3175_v4 }
 0xb39   :  { %4336 = shalt.err (!%p4333_p4)
}
 0xb3a   :  { %s4337_s4 = scalar_lea.hbm %s5959_s15, 32 }
 0xb3b   :  { %p4338_p5 = scmp.ne.s32.totalorder %s5959_s15, %s4337_s4  ;;  %p4341_p6 = scmp.lt.u32.totalorder %s4337_s4, %s5959_s15 }
 0xb3d   :  { %p4343_p7 = pnand %p4341_p6, %p4338_p5 }
 0xb3f   :  { %4346 = shalt.err (!%p4343_p7)
}
 0xb40   :  { %3187 = dma.vmem_to_hbm [thread:$0]  %s3185_s13, 32, %s5959_s15, [#allocation4]  }
 0xb41   :  { %4347 = dma.done.wait [#allocation4], 32  }
 0xb42   :  { %4348 = vsyncadd [#allocation4], 4294967264 }
 0xb43   :  { %3191 = vsyncpa [#allocation4], 1 }

</bundles_post_ra>
